<compile_context>
chip_gen: v6e
topology: v6e:2x2x1
jax: 0.10.0
libtpu: 0.0.40
codegen_flags: <defaults>
</compile_context>

<pallas_src>
import functools

import jax
import jax.numpy as jnp
from jax.experimental import pallas as pl
from jax.experimental.pallas import tpu as pltpu


# ------------------------------- kernel --------------------------------------

def _fused_attention_kernel(x_ref, wqkv_ref, wp_ref, bp_ref, o_ref,
                            qkv_scr, o_scr, *, num_heads):
    # Blocks: x_ref/o_ref (1, N, C); wqkv_ref (3C, C) bf16 (q rows pre-scaled);
    #         wp_ref (C, C) bf16 (= proj_weight^T); bp_ref (1, C) f32.
    # Scratch: qkv_scr (3C, N) f32, o_scr (C, N) f32.
    N = x_ref.shape[1]
    C = x_ref.shape[2]
    D = C // num_heads

    # Fused QKV projection, computed directly in transposed layout:
    #   qkv^T = Wqkv @ x^T, expressed as an RHS-transposed (trans_b) matmul so the
    #   MXU uses its native transposed-operand path.  Heads now split along
    #   SUBLANES (multiples of 8 rows) instead of 8-lane windows.
    x_bf = x_ref[0].astype(jnp.bfloat16)                          # (N, C)
    qkv_scr[...] = jax.lax.dot_general(
        wqkv_ref[...], x_bf, (((1,), (1,)), ((), ())),
        preferred_element_type=jnp.float32)                       # (3C, N) f32

    # Per-head attention.  Every slice below is an aligned 8-row sublane window
    # of f32 scratch (no masked sub-128-lane accesses, no lane shuffles).
    # NOTE: the body is small and slice-free, so the static unroll over H=16
    # keeps vreg pressure low; for much larger H use lax.fori_loop + pl.ds.
    for h in range(num_heads):
        r = h * D
        q_t = qkv_scr[r:r + D, :]                                 # (D, N) f32
        k_t = qkv_scr[C + r:C + r + D, :]                         # (D, N) f32
        v_t = qkv_scr[2 * C + r:2 * C + r + D, :]                 # (D, N) f32

        # Scores with keys on sublanes, queries on lanes: (Nk, Nq).
        # (scale already folded into the Q weights -> no (N,N) multiply here)
        s = jnp.dot(k_t.T, q_t, preferred_element_type=jnp.float32)

        # Numerically-stable softmax over keys (axis 0), all f32.
        s = s - jnp.max(s, axis=0, keepdims=True)
        e = jnp.exp(s)                                            # (Nk, Nq)
        denom = jnp.sum(e, axis=0, keepdims=True)                 # (1, Nq)
        inv = pl.reciprocal(denom, approx=True)                   # EUP estimate
        inv = inv * (2.0 - denom * inv)                           # Newton -> f32 acc.

        # Unnormalized PV matmul, then apply 1/denom on the (D, Nq) result
        # (N/D x fewer VPU multiplies than scaling the (Nk, Nq) tile).
        # attn_drop(p=0, eval) -> identity.
        o_t_h = jnp.dot(v_t, e, preferred_element_type=jnp.float32)   # (D, Nq)
        o_scr[r:r + D, :] = o_t_h * inv                           # aligned sublane store

    # Head merge is already done by the (C, N) layout of o_scr (rows h*D..): one
    # full-width transpose + bf16 cast feeds the output projection; the HBM store
    # stays a lane-dense (N, C) store.  proj_drop(p=0, eval) -> identity.
    o_merged = o_scr[...].T.astype(jnp.bfloat16)                  # (N, C) bf16
    out = jnp.dot(o_merged, wp_ref[...],
                  preferred_element_type=jnp.float32)             # (N, C) f32
    o_ref[0] = out + bp_ref[...]


# ------------------------------- wrapper --------------------------------------

def prepare_params(torch_params, *, num_heads):
    """One-time conversion from PyTorch Linear layout to kernel layout.

    * Softmax scale D**-0.5 is folded into the Q rows of the QKV weight.
    * MXU weights are stored in bf16 (halves weight DMA/VMEM; f32 accumulation
      in-kernel), bias stays f32.
    """
    w_qkv = jnp.asarray(torch_params["w_qkv"], jnp.float32)        # (3C, C)
    C = w_qkv.shape[1]
    D = C // num_heads
    scale = D ** (-0.5)
    w_qkv = w_qkv.at[:C].multiply(scale)                           # fold scale into Q
    return {
        "wqkv": w_qkv.astype(jnp.bfloat16),                        # (3C, C)
        "wp_t": jnp.asarray(torch_params["w_proj"]).T.astype(jnp.bfloat16),  # (C, C)
        "bp": jnp.asarray(torch_params["b_proj"], jnp.float32).reshape(1, -1),  # (1, C)
    }


def attention_forward(params, x, xpos, *, num_heads):
    """Fused Pallas forward of Attention (rope=None, dropout=0, eval mode)."""
    # TODO(synk): rope is None in this configuration, so xpos is unused.
    del xpos
    B, N, C = x.shape

    kernel = functools.partial(_fused_attention_kernel, num_heads=num_heads)

    return pl.pallas_call(
        kernel,
        grid=(B,),
        in_specs=[
            pl.BlockSpec((1, N, C), lambda b: (b, 0, 0)),          # x
            pl.BlockSpec((3 * C, C), lambda b: (0, 0)),            # qkv weight (bf16, q-scaled)
            pl.BlockSpec((C, C), lambda b: (0, 0)),                # proj weight^T (bf16)
            pl.BlockSpec((1, C), lambda b: (0, 0)),                # proj bias (f32)
        ],
        out_specs=pl.BlockSpec((1, N, C), lambda b: (b, 0, 0)),
        out_shape=jax.ShapeDtypeStruct((B, N, C), jnp.float32),
        scratch_shapes=[
            pltpu.VMEM((3 * C, N), jnp.float32),                   # qkv^T (heads on sublanes)
            pltpu.VMEM((C, N), jnp.float32),                       # merged head outputs^T
        ],
        compiler_params=pltpu.CompilerParams(
            dimension_semantics=("parallel",)),
    )(x, params["wqkv"], params["wp_t"], params["bp"])


# --------------------------- pure-JAX reference --------------------------------

def reference_forward(torch_params, x, *, num_heads):
    B, N, C = x.shape
    D = C // num_heads
    scale = D ** (-0.5)
    qkv = x @ torch_params["w_qkv"].T                              # (B, N, 3C)
    qkv = qkv.reshape(B, N, 3, num_heads, D)
    qkv = jnp.transpose(qkv, (0, 3, 2, 1, 4))                      # torch .transpose(1, 3)
    q, k, v = qkv[:, :, 0], qkv[:, :, 1], qkv[:, :, 2]             # (B, H, N, D)
    attn = jnp.einsum("bhnd,bhmd->bhnm", q, k) * scale
    attn = jax.nn.softmax(attn, axis=-1)
    out = jnp.einsum("bhnm,bhmd->bhnd", attn, v)                   # (B, H, N, D)
    out = jnp.transpose(out, (0, 2, 1, 3)).reshape(B, N, C)
    return out @ torch_params["w_proj"].T + torch_params["b_proj"]


# ---------------------------------- main ---------------------------------------

if __name__ == "__main__":
    B, N, C = 2, 8, 128
    num_heads = 16            # module default; head_dim = 8

    key0 = jax.random.PRNGKey(0)
    ks = jax.random.split(key0, 4)
    bound = 1.0 / (C ** 0.5)

    # Deterministic synthetic parameters (PyTorch Linear layout: weight = (out, in)).
    torch_params = {
        "w_qkv": jax.random.uniform(ks[0], (3 * C, C), jnp.float32, -bound, bound),
        "w_proj": jax.random.uniform(ks[1], (C, C), jnp.float32, -bound, bound),
        "b_proj": jax.random.uniform(ks[2], (C,), jnp.float32, -bound, bound),
    }
    x = jax.random.normal(ks[3], (B, N, C), jnp.float32)
    xpos = jnp.tile(jnp.arange(N, dtype=jnp.int32)[None, :], (B, 1))  # unused (rope=None)

    params = prepare_params(torch_params, num_heads=num_heads)     # one-time layout/bf16/scale
    out = attention_forward(params, x, xpos, num_heads=num_heads)
    out = jax.block_until_ready(out)

    ref = reference_forward(torch_params, x, num_heads=num_heads)
    assert out.shape == (B, N, C)
    max_err = jnp.max(jnp.abs(out - ref))
    # bf16 MXU operands -> loosened tolerance vs. the f32 reference.
    assert jnp.allclose(out, ref, atol=3e-2, rtol=3e-2), f"max abs err {max_err}"

    print("KERNEL_OK")
</pallas_src>

<mosaic_0001>
module attributes {stable_mosaic.version = 11 : i64} {
  func.func @_fused_attention_kernel(%arg0: i32, %arg1: memref<1x8x128xf32, #tpu.memory_space<vmem>>, %arg2: memref<384x128xbf16, #tpu.memory_space<vmem>>, %arg3: memref<128x128xbf16, #tpu.memory_space<vmem>>, %arg4: memref<1x128xf32, #tpu.memory_space<vmem>>, %arg5: memref<1x8x128xf32, #tpu.memory_space<vmem>>, %arg6: memref<384x8xf32, #tpu.memory_space<vmem>>, %arg7: memref<128x8xf32, #tpu.memory_space<vmem>>) attributes {dimension_semantics = [#tpu.dimension_semantics<parallel>], iteration_bounds = array<i64: 2>, scalar_prefetch = 0 : i64, scratch_operands = 2 : i64, tpu.core_type = #tpu.core_type<tc>, window_params = [{transform_indices = @transform_0, window_bounds = array<i64: 1, 8, 128>}, {pipeline_mode = #tpu.pipeline_mode<synchronous>, transform_indices = @transform_1, window_bounds = array<i64: 384, 128>}, {pipeline_mode = #tpu.pipeline_mode<synchronous>, transform_indices = @transform_2, window_bounds = array<i64: 128, 128>}, {pipeline_mode = #tpu.pipeline_mode<synchronous>, transform_indices = @transform_3, window_bounds = array<i64: 1, 128>}, {transform_indices = @transform_4, window_bounds = array<i64: 1, 8, 128>}]} {
    %c0 = arith.constant 0 : index
    %c0_0 = arith.constant 0 : index
    %c0_1 = arith.constant 0 : index
    %0 = vector.load %arg1[%c0, %c0_0, %c0_1] : memref<1x8x128xf32, #tpu.memory_space<vmem>>, vector<1x8x128xf32>
    %1 = vector.shape_cast %0 : vector<1x8x128xf32> to vector<8x128xf32>
    %2 = arith.truncf %1 : vector<8x128xf32> to vector<8x128xbf16>
    %c0_2 = arith.constant 0 : index
    %c0_3 = arith.constant 0 : index
    %3 = vector.load %arg2[%c0_2, %c0_3] : memref<384x128xbf16, #tpu.memory_space<vmem>>, vector<384x128xbf16>
    %cst = arith.constant dense<0.000000e+00> : vector<384x8xf32>
    %4 = tpu.matmul %3, %2, %cst {dimension_numbers = #tpu.dot_dimension_numbers<[1], [1], [0], [0], [0, 0, 1, 0], [], []>} : vector<384x128xbf16>, vector<8x128xbf16>, vector<384x8xf32> -> vector<384x8xf32>
    %c0_4 = arith.constant 0 : index
    %c0_5 = arith.constant 0 : index
    %5 = vector.load %arg6[%c0_4, %c0_5] : memref<384x8xf32, #tpu.memory_space<vmem>>, vector<384x8xf32>
    tpu.vector_store %arg6[%c0_4, %c0_5], %4 {strides = array<i32>} : memref<384x8xf32, #tpu.memory_space<vmem>>, vector<384x8xf32>,
    %c0_6 = arith.constant 0 : index
    %c0_7 = arith.constant 0 : index
    %6 = vector.load %arg6[%c0_6, %c0_7] : memref<384x8xf32, #tpu.memory_space<vmem>>, vector<8x8xf32>
    %c128 = arith.constant 128 : index
    %c0_8 = arith.constant 0 : index
    %7 = vector.load %arg6[%c128, %c0_8] : memref<384x8xf32, #tpu.memory_space<vmem>>, vector<8x8xf32>
    %c256 = arith.constant 256 : index
    %c0_9 = arith.constant 0 : index
    %8 = vector.load %arg6[%c256, %c0_9] : memref<384x8xf32, #tpu.memory_space<vmem>>, vector<8x8xf32>
    %9 = tpu.transpose %7, [1, 0] : vector<8x8xf32> -> vector<8x8xf32>
    %cst_10 = arith.constant dense<0.000000e+00> : vector<8x8xf32>
    %10 = tpu.matmul %9, %6, %cst_10 {dimension_numbers = #tpu.dot_dimension_numbers<[1], [0], [0], [1], [0, 0, 1, 1], [], []>} : vector<8x8xf32>, vector<8x8xf32>, vector<8x8xf32> -> vector<8x8xf32>
    %cst_11 = arith.constant dense<0xFF800000> : vector<8xf32>
    %11 = vector.multi_reduction <maximumf>, %10, %cst_11 [0] : vector<8x8xf32> to vector<8xf32>
    %12 = vector.shape_cast %11 : vector<8xf32> to vector<1x8xf32>
    %13 = vector.broadcast %12 : vector<1x8xf32> to vector<8x8xf32>
    %14 = arith.subf %10, %13 : vector<8x8xf32>
    %15 = math.exp %14 : vector<8x8xf32>
    %cst_12 = arith.constant dense<0.000000e+00> : vector<8xf32>
    %16 = vector.multi_reduction <add>, %15, %cst_12 [0] : vector<8x8xf32> to vector<8xf32>
    %17 = vector.shape_cast %16 : vector<8xf32> to vector<1x8xf32>
    %18 = tpu.reciprocal %17 {approx = true} : vector<1x8xf32> -> vector<1x8xf32>
    %19 = arith.mulf %17, %18 : vector<1x8xf32>
    %cst_13 = arith.constant 2.000000e+00 : f32
    %20 = vector.broadcast %cst_13 : f32 to vector<1x8xf32>
    %21 = arith.subf %20, %19 : vector<1x8xf32>
    %22 = arith.mulf %18, %21 : vector<1x8xf32>
    %cst_14 = arith.constant dense<0.000000e+00> : vector<8x8xf32>
    %23 = tpu.matmul %8, %15, %cst_14 {dimension_numbers = #tpu.dot_dimension_numbers<[1], [0], [0], [1], [0, 0, 1, 1], [], []>} : vector<8x8xf32>, vector<8x8xf32>, vector<8x8xf32> -> vector<8x8xf32>
    %24 = vector.broadcast %22 : vector<1x8xf32> to vector<8x8xf32>
    %25 = arith.mulf %23, %24 : vector<8x8xf32>
    %c0_15 = arith.constant 0 : index
    %c0_16 = arith.constant 0 : index
    %26 = vector.load %arg7[%c0_15, %c0_16] : memref<128x8xf32, #tpu.memory_space<vmem>>, vector<8x8xf32>
    tpu.vector_store %arg7[%c0_15, %c0_16], %25 {strides = array<i32>} : memref<128x8xf32, #tpu.memory_space<vmem>>, vector<8x8xf32>,
    %c8 = arith.constant 8 : index
    %c0_17 = arith.constant 0 : index
    %27 = vector.load %arg6[%c8, %c0_17] : memref<384x8xf32, #tpu.memory_space<vmem>>, vector<8x8xf32>
    %c136 = arith.constant 136 : index
    %c0_18 = arith.constant 0 : index
    %28 = vector.load %arg6[%c136, %c0_18] : memref<384x8xf32, #tpu.memory_space<vmem>>, vector<8x8xf32>
    %c264 = arith.constant 264 : index
    %c0_19 = arith.constant 0 : index
    %29 = vector.load %arg6[%c264, %c0_19] : memref<384x8xf32, #tpu.memory_space<vmem>>, vector<8x8xf32>
    %30 = tpu.transpose %28, [1, 0] : vector<8x8xf32> -> vector<8x8xf32>
    %cst_20 = arith.constant dense<0.000000e+00> : vector<8x8xf32>
    %31 = tpu.matmul %30, %27, %cst_20 {dimension_numbers = #tpu.dot_dimension_numbers<[1], [0], [0], [1], [0, 0, 1, 1], [], []>} : vector<8x8xf32>, vector<8x8xf32>, vector<8x8xf32> -> vector<8x8xf32>
    %cst_21 = arith.constant dense<0xFF800000> : vector<8xf32>
    %32 = vector.multi_reduction <maximumf>, %31, %cst_21 [0] : vector<8x8xf32> to vector<8xf32>
    %33 = vector.shape_cast %32 : vector<8xf32> to vector<1x8xf32>
    %34 = vector.broadcast %33 : vector<1x8xf32> to vector<8x8xf32>
    %35 = arith.subf %31, %34 : vector<8x8xf32>
    %36 = math.exp %35 : vector<8x8xf32>
    %cst_22 = arith.constant dense<0.000000e+00> : vector<8xf32>
    %37 = vector.multi_reduction <add>, %36, %cst_22 [0] : vector<8x8xf32> to vector<8xf32>
    %38 = vector.shape_cast %37 : vector<8xf32> to vector<1x8xf32>
    %39 = tpu.reciprocal %38 {approx = true} : vector<1x8xf32> -> vector<1x8xf32>
    %40 = arith.mulf %38, %39 : vector<1x8xf32>
    %cst_23 = arith.constant 2.000000e+00 : f32
    %41 = vector.broadcast %cst_23 : f32 to vector<1x8xf32>
    %42 = arith.subf %41, %40 : vector<1x8xf32>
    %43 = arith.mulf %39, %42 : vector<1x8xf32>
    %cst_24 = arith.constant dense<0.000000e+00> : vector<8x8xf32>
    %44 = tpu.matmul %29, %36, %cst_24 {dimension_numbers = #tpu.dot_dimension_numbers<[1], [0], [0], [1], [0, 0, 1, 1], [], []>} : vector<8x8xf32>, vector<8x8xf32>, vector<8x8xf32> -> vector<8x8xf32>
    %45 = vector.broadcast %43 : vector<1x8xf32> to vector<8x8xf32>
    %46 = arith.mulf %44, %45 : vector<8x8xf32>
    %c8_25 = arith.constant 8 : index
    %c0_26 = arith.constant 0 : index
    %47 = vector.load %arg7[%c8_25, %c0_26] : memref<128x8xf32, #tpu.memory_space<vmem>>, vector<8x8xf32>
    tpu.vector_store %arg7[%c8_25, %c0_26], %46 {strides = array<i32>} : memref<128x8xf32, #tpu.memory_space<vmem>>, vector<8x8xf32>,
    %c16 = arith.constant 16 : index
    %c0_27 = arith.constant 0 : index
    %48 = vector.load %arg6[%c16, %c0_27] : memref<384x8xf32, #tpu.memory_space<vmem>>, vector<8x8xf32>
    %c144 = arith.constant 144 : index
    %c0_28 = arith.constant 0 : index
    %49 = vector.load %arg6[%c144, %c0_28] : memref<384x8xf32, #tpu.memory_space<vmem>>, vector<8x8xf32>
    %c272 = arith.constant 272 : index
    %c0_29 = arith.constant 0 : index
    %50 = vector.load %arg6[%c272, %c0_29] : memref<384x8xf32, #tpu.memory_space<vmem>>, vector<8x8xf32>
    %51 = tpu.transpose %49, [1, 0] : vector<8x8xf32> -> vector<8x8xf32>
    %cst_30 = arith.constant dense<0.000000e+00> : vector<8x8xf32>
    %52 = tpu.matmul %51, %48, %cst_30 {dimension_numbers = #tpu.dot_dimension_numbers<[1], [0], [0], [1], [0, 0, 1, 1], [], []>} : vector<8x8xf32>, vector<8x8xf32>, vector<8x8xf32> -> vector<8x8xf32>
    %cst_31 = arith.constant dense<0xFF800000> : vector<8xf32>
    %53 = vector.multi_reduction <maximumf>, %52, %cst_31 [0] : vector<8x8xf32> to vector<8xf32>
    %54 = vector.shape_cast %53 : vector<8xf32> to vector<1x8xf32>
    %55 = vector.broadcast %54 : vector<1x8xf32> to vector<8x8xf32>
    %56 = arith.subf %52, %55 : vector<8x8xf32>
    %57 = math.exp %56 : vector<8x8xf32>
    %cst_32 = arith.constant dense<0.000000e+00> : vector<8xf32>
    %58 = vector.multi_reduction <add>, %57, %cst_32 [0] : vector<8x8xf32> to vector<8xf32>
    %59 = vector.shape_cast %58 : vector<8xf32> to vector<1x8xf32>
    %60 = tpu.reciprocal %59 {approx = true} : vector<1x8xf32> -> vector<1x8xf32>
    %61 = arith.mulf %59, %60 : vector<1x8xf32>
    %cst_33 = arith.constant 2.000000e+00 : f32
    %62 = vector.broadcast %cst_33 : f32 to vector<1x8xf32>
    %63 = arith.subf %62, %61 : vector<1x8xf32>
    %64 = arith.mulf %60, %63 : vector<1x8xf32>
    %cst_34 = arith.constant dense<0.000000e+00> : vector<8x8xf32>
    %65 = tpu.matmul %50, %57, %cst_34 {dimension_numbers = #tpu.dot_dimension_numbers<[1], [0], [0], [1], [0, 0, 1, 1], [], []>} : vector<8x8xf32>, vector<8x8xf32>, vector<8x8xf32> -> vector<8x8xf32>
    %66 = vector.broadcast %64 : vector<1x8xf32> to vector<8x8xf32>
    %67 = arith.mulf %65, %66 : vector<8x8xf32>
    %c16_35 = arith.constant 16 : index
    %c0_36 = arith.constant 0 : index
    %68 = vector.load %arg7[%c16_35, %c0_36] : memref<128x8xf32, #tpu.memory_space<vmem>>, vector<8x8xf32>
    tpu.vector_store %arg7[%c16_35, %c0_36], %67 {strides = array<i32>} : memref<128x8xf32, #tpu.memory_space<vmem>>, vector<8x8xf32>,
    %c24 = arith.constant 24 : index
    %c0_37 = arith.constant 0 : index
    %69 = vector.load %arg6[%c24, %c0_37] : memref<384x8xf32, #tpu.memory_space<vmem>>, vector<8x8xf32>
    %c152 = arith.constant 152 : index
    %c0_38 = arith.constant 0 : index
    %70 = vector.load %arg6[%c152, %c0_38] : memref<384x8xf32, #tpu.memory_space<vmem>>, vector<8x8xf32>
    %c280 = arith.constant 280 : index
    %c0_39 = arith.constant 0 : index
    %71 = vector.load %arg6[%c280, %c0_39] : memref<384x8xf32, #tpu.memory_space<vmem>>, vector<8x8xf32>
    %72 = tpu.transpose %70, [1, 0] : vector<8x8xf32> -> vector<8x8xf32>
    %cst_40 = arith.constant dense<0.000000e+00> : vector<8x8xf32>
    %73 = tpu.matmul %72, %69, %cst_40 {dimension_numbers = #tpu.dot_dimension_numbers<[1], [0], [0], [1], [0, 0, 1, 1], [], []>} : vector<8x8xf32>, vector<8x8xf32>, vector<8x8xf32> -> vector<8x8xf32>
    %cst_41 = arith.constant dense<0xFF800000> : vector<8xf32>
    %74 = vector.multi_reduction <maximumf>, %73, %cst_41 [0] : vector<8x8xf32> to vector<8xf32>
    %75 = vector.shape_cast %74 : vector<8xf32> to vector<1x8xf32>
    %76 = vector.broadcast %75 : vector<1x8xf32> to vector<8x8xf32>
    %77 = arith.subf %73, %76 : vector<8x8xf32>
    %78 = math.exp %77 : vector<8x8xf32>
    %cst_42 = arith.constant dense<0.000000e+00> : vector<8xf32>
    %79 = vector.multi_reduction <add>, %78, %cst_42 [0] : vector<8x8xf32> to vector<8xf32>
    %80 = vector.shape_cast %79 : vector<8xf32> to vector<1x8xf32>
    %81 = tpu.reciprocal %80 {approx = true} : vector<1x8xf32> -> vector<1x8xf32>
    %82 = arith.mulf %80, %81 : vector<1x8xf32>
    %cst_43 = arith.constant 2.000000e+00 : f32
    %83 = vector.broadcast %cst_43 : f32 to vector<1x8xf32>
    %84 = arith.subf %83, %82 : vector<1x8xf32>
    %85 = arith.mulf %81, %84 : vector<1x8xf32>
    %cst_44 = arith.constant dense<0.000000e+00> : vector<8x8xf32>
    %86 = tpu.matmul %71, %78, %cst_44 {dimension_numbers = #tpu.dot_dimension_numbers<[1], [0], [0], [1], [0, 0, 1, 1], [], []>} : vector<8x8xf32>, vector<8x8xf32>, vector<8x8xf32> -> vector<8x8xf32>
    %87 = vector.broadcast %85 : vector<1x8xf32> to vector<8x8xf32>
    %88 = arith.mulf %86, %87 : vector<8x8xf32>
    %c24_45 = arith.constant 24 : index
    %c0_46 = arith.constant 0 : index
    %89 = vector.load %arg7[%c24_45, %c0_46] : memref<128x8xf32, #tpu.memory_space<vmem>>, vector<8x8xf32>
    tpu.vector_store %arg7[%c24_45, %c0_46], %88 {strides = array<i32>} : memref<128x8xf32, #tpu.memory_space<vmem>>, vector<8x8xf32>,
    %c32 = arith.constant 32 : index
    %c0_47 = arith.constant 0 : index
    %90 = vector.load %arg6[%c32, %c0_47] : memref<384x8xf32, #tpu.memory_space<vmem>>, vector<8x8xf32>
    %c160 = arith.constant 160 : index
    %c0_48 = arith.constant 0 : index
    %91 = vector.load %arg6[%c160, %c0_48] : memref<384x8xf32, #tpu.memory_space<vmem>>, vector<8x8xf32>
    %c288 = arith.constant 288 : index
    %c0_49 = arith.constant 0 : index
    %92 = vector.load %arg6[%c288, %c0_49] : memref<384x8xf32, #tpu.memory_space<vmem>>, vector<8x8xf32>
    %93 = tpu.transpose %91, [1, 0] : vector<8x8xf32> -> vector<8x8xf32>
    %cst_50 = arith.constant dense<0.000000e+00> : vector<8x8xf32>
    %94 = tpu.matmul %93, %90, %cst_50 {dimension_numbers = #tpu.dot_dimension_numbers<[1], [0], [0], [1], [0, 0, 1, 1], [], []>} : vector<8x8xf32>, vector<8x8xf32>, vector<8x8xf32> -> vector<8x8xf32>
    %cst_51 = arith.constant dense<0xFF800000> : vector<8xf32>
    %95 = vector.multi_reduction <maximumf>, %94, %cst_51 [0] : vector<8x8xf32> to vector<8xf32>
    %96 = vector.shape_cast %95 : vector<8xf32> to vector<1x8xf32>
    %97 = vector.broadcast %96 : vector<1x8xf32> to vector<8x8xf32>
    %98 = arith.subf %94, %97 : vector<8x8xf32>
    %99 = math.exp %98 : vector<8x8xf32>
    %cst_52 = arith.constant dense<0.000000e+00> : vector<8xf32>
    %100 = vector.multi_reduction <add>, %99, %cst_52 [0] : vector<8x8xf32> to vector<8xf32>
    %101 = vector.shape_cast %100 : vector<8xf32> to vector<1x8xf32>
    %102 = tpu.reciprocal %101 {approx = true} : vector<1x8xf32> -> vector<1x8xf32>
    %103 = arith.mulf %101, %102 : vector<1x8xf32>
    %cst_53 = arith.constant 2.000000e+00 : f32
    %104 = vector.broadcast %cst_53 : f32 to vector<1x8xf32>
    %105 = arith.subf %104, %103 : vector<1x8xf32>
    %106 = arith.mulf %102, %105 : vector<1x8xf32>
    %cst_54 = arith.constant dense<0.000000e+00> : vector<8x8xf32>
    %107 = tpu.matmul %92, %99, %cst_54 {dimension_numbers = #tpu.dot_dimension_numbers<[1], [0], [0], [1], [0, 0, 1, 1], [], []>} : vector<8x8xf32>, vector<8x8xf32>, vector<8x8xf32> -> vector<8x8xf32>
    %108 = vector.broadcast %106 : vector<1x8xf32> to vector<8x8xf32>
    %109 = arith.mulf %107, %108 : vector<8x8xf32>
    %c32_55 = arith.constant 32 : index
    %c0_56 = arith.constant 0 : index
    %110 = vector.load %arg7[%c32_55, %c0_56] : memref<128x8xf32, #tpu.memory_space<vmem>>, vector<8x8xf32>
    tpu.vector_store %arg7[%c32_55, %c0_56], %109 {strides = array<i32>} : memref<128x8xf32, #tpu.memory_space<vmem>>, vector<8x8xf32>,
    %c40 = arith.constant 40 : index
    %c0_57 = arith.constant 0 : index
    %111 = vector.load %arg6[%c40, %c0_57] : memref<384x8xf32, #tpu.memory_space<vmem>>, vector<8x8xf32>
    %c168 = arith.constant 168 : index
    %c0_58 = arith.constant 0 : index
    %112 = vector.load %arg6[%c168, %c0_58] : memref<384x8xf32, #tpu.memory_space<vmem>>, vector<8x8xf32>
    %c296 = arith.constant 296 : index
    %c0_59 = arith.constant 0 : index
    %113 = vector.load %arg6[%c296, %c0_59] : memref<384x8xf32, #tpu.memory_space<vmem>>, vector<8x8xf32>
    %114 = tpu.transpose %112, [1, 0] : vector<8x8xf32> -> vector<8x8xf32>
    %cst_60 = arith.constant dense<0.000000e+00> : vector<8x8xf32>
    %115 = tpu.matmul %114, %111, %cst_60 {dimension_numbers = #tpu.dot_dimension_numbers<[1], [0], [0], [1], [0, 0, 1, 1], [], []>} : vector<8x8xf32>, vector<8x8xf32>, vector<8x8xf32> -> vector<8x8xf32>
    %cst_61 = arith.constant dense<0xFF800000> : vector<8xf32>
    %116 = vector.multi_reduction <maximumf>, %115, %cst_61 [0] : vector<8x8xf32> to vector<8xf32>
    %117 = vector.shape_cast %116 : vector<8xf32> to vector<1x8xf32>
    %118 = vector.broadcast %117 : vector<1x8xf32> to vector<8x8xf32>
    %119 = arith.subf %115, %118 : vector<8x8xf32>
    %120 = math.exp %119 : vector<8x8xf32>
    %cst_62 = arith.constant dense<0.000000e+00> : vector<8xf32>
    %121 = vector.multi_reduction <add>, %120, %cst_62 [0] : vector<8x8xf32> to vector<8xf32>
    %122 = vector.shape_cast %121 : vector<8xf32> to vector<1x8xf32>
    %123 = tpu.reciprocal %122 {approx = true} : vector<1x8xf32> -> vector<1x8xf32>
    %124 = arith.mulf %122, %123 : vector<1x8xf32>
    %cst_63 = arith.constant 2.000000e+00 : f32
    %125 = vector.broadcast %cst_63 : f32 to vector<1x8xf32>
    %126 = arith.subf %125, %124 : vector<1x8xf32>
    %127 = arith.mulf %123, %126 : vector<1x8xf32>
    %cst_64 = arith.constant dense<0.000000e+00> : vector<8x8xf32>
    %128 = tpu.matmul %113, %120, %cst_64 {dimension_numbers = #tpu.dot_dimension_numbers<[1], [0], [0], [1], [0, 0, 1, 1], [], []>} : vector<8x8xf32>, vector<8x8xf32>, vector<8x8xf32> -> vector<8x8xf32>
    %129 = vector.broadcast %127 : vector<1x8xf32> to vector<8x8xf32>
    %130 = arith.mulf %128, %129 : vector<8x8xf32>
    %c40_65 = arith.constant 40 : index
    %c0_66 = arith.constant 0 : index
    %131 = vector.load %arg7[%c40_65, %c0_66] : memref<128x8xf32, #tpu.memory_space<vmem>>, vector<8x8xf32>
    tpu.vector_store %arg7[%c40_65, %c0_66], %130 {strides = array<i32>} : memref<128x8xf32, #tpu.memory_space<vmem>>, vector<8x8xf32>,
    %c48 = arith.constant 48 : index
    %c0_67 = arith.constant 0 : index
    %132 = vector.load %arg6[%c48, %c0_67] : memref<384x8xf32, #tpu.memory_space<vmem>>, vector<8x8xf32>
    %c176 = arith.constant 176 : index
    %c0_68 = arith.constant 0 : index
    %133 = vector.load %arg6[%c176, %c0_68] : memref<384x8xf32, #tpu.memory_space<vmem>>, vector<8x8xf32>
    %c304 = arith.constant 304 : index
    %c0_69 = arith.constant 0 : index
    %134 = vector.load %arg6[%c304, %c0_69] : memref<384x8xf32, #tpu.memory_space<vmem>>, vector<8x8xf32>
    %135 = tpu.transpose %133, [1, 0] : vector<8x8xf32> -> vector<8x8xf32>
    %cst_70 = arith.constant dense<0.000000e+00> : vector<8x8xf32>
    %136 = tpu.matmul %135, %132, %cst_70 {dimension_numbers = #tpu.dot_dimension_numbers<[1], [0], [0], [1], [0, 0, 1, 1], [], []>} : vector<8x8xf32>, vector<8x8xf32>, vector<8x8xf32> -> vector<8x8xf32>
    %cst_71 = arith.constant dense<0xFF800000> : vector<8xf32>
    %137 = vector.multi_reduction <maximumf>, %136, %cst_71 [0] : vector<8x8xf32> to vector<8xf32>
    %138 = vector.shape_cast %137 : vector<8xf32> to vector<1x8xf32>
    %139 = vector.broadcast %138 : vector<1x8xf32> to vector<8x8xf32>
    %140 = arith.subf %136, %139 : vector<8x8xf32>
    %141 = math.exp %140 : vector<8x8xf32>
    %cst_72 = arith.constant dense<0.000000e+00> : vector<8xf32>
    %142 = vector.multi_reduction <add>, %141, %cst_72 [0] : vector<8x8xf32> to vector<8xf32>
    %143 = vector.shape_cast %142 : vector<8xf32> to vector<1x8xf32>
    %144 = tpu.reciprocal %143 {approx = true} : vector<1x8xf32> -> vector<1x8xf32>
    %145 = arith.mulf %143, %144 : vector<1x8xf32>
    %cst_73 = arith.constant 2.000000e+00 : f32
    %146 = vector.broadcast %cst_73 : f32 to vector<1x8xf32>
    %147 = arith.subf %146, %145 : vector<1x8xf32>
    %148 = arith.mulf %144, %147 : vector<1x8xf32>
    %cst_74 = arith.constant dense<0.000000e+00> : vector<8x8xf32>
    %149 = tpu.matmul %134, %141, %cst_74 {dimension_numbers = #tpu.dot_dimension_numbers<[1], [0], [0], [1], [0, 0, 1, 1], [], []>} : vector<8x8xf32>, vector<8x8xf32>, vector<8x8xf32> -> vector<8x8xf32>
    %150 = vector.broadcast %148 : vector<1x8xf32> to vector<8x8xf32>
    %151 = arith.mulf %149, %150 : vector<8x8xf32>
    %c48_75 = arith.constant 48 : index
    %c0_76 = arith.constant 0 : index
    %152 = vector.load %arg7[%c48_75, %c0_76] : memref<128x8xf32, #tpu.memory_space<vmem>>, vector<8x8xf32>
    tpu.vector_store %arg7[%c48_75, %c0_76], %151 {strides = array<i32>} : memref<128x8xf32, #tpu.memory_space<vmem>>, vector<8x8xf32>,
    %c56 = arith.constant 56 : index
    %c0_77 = arith.constant 0 : index
    %153 = vector.load %arg6[%c56, %c0_77] : memref<384x8xf32, #tpu.memory_space<vmem>>, vector<8x8xf32>
    %c184 = arith.constant 184 : index
    %c0_78 = arith.constant 0 : index
    %154 = vector.load %arg6[%c184, %c0_78] : memref<384x8xf32, #tpu.memory_space<vmem>>, vector<8x8xf32>
    %c312 = arith.constant 312 : index
    %c0_79 = arith.constant 0 : index
    %155 = vector.load %arg6[%c312, %c0_79] : memref<384x8xf32, #tpu.memory_space<vmem>>, vector<8x8xf32>
    %156 = tpu.transpose %154, [1, 0] : vector<8x8xf32> -> vector<8x8xf32>
    %cst_80 = arith.constant dense<0.000000e+00> : vector<8x8xf32>
    %157 = tpu.matmul %156, %153, %cst_80 {dimension_numbers = #tpu.dot_dimension_numbers<[1], [0], [0], [1], [0, 0, 1, 1], [], []>} : vector<8x8xf32>, vector<8x8xf32>, vector<8x8xf32> -> vector<8x8xf32>
    %cst_81 = arith.constant dense<0xFF800000> : vector<8xf32>
    %158 = vector.multi_reduction <maximumf>, %157, %cst_81 [0] : vector<8x8xf32> to vector<8xf32>
    %159 = vector.shape_cast %158 : vector<8xf32> to vector<1x8xf32>
    %160 = vector.broadcast %159 : vector<1x8xf32> to vector<8x8xf32>
    %161 = arith.subf %157, %160 : vector<8x8xf32>
    %162 = math.exp %161 : vector<8x8xf32>
    %cst_82 = arith.constant dense<0.000000e+00> : vector<8xf32>
    %163 = vector.multi_reduction <add>, %162, %cst_82 [0] : vector<8x8xf32> to vector<8xf32>
    %164 = vector.shape_cast %163 : vector<8xf32> to vector<1x8xf32>
    %165 = tpu.reciprocal %164 {approx = true} : vector<1x8xf32> -> vector<1x8xf32>
    %166 = arith.mulf %164, %165 : vector<1x8xf32>
    %cst_83 = arith.constant 2.000000e+00 : f32
    %167 = vector.broadcast %cst_83 : f32 to vector<1x8xf32>
    %168 = arith.subf %167, %166 : vector<1x8xf32>
    %169 = arith.mulf %165, %168 : vector<1x8xf32>
    %cst_84 = arith.constant dense<0.000000e+00> : vector<8x8xf32>
    %170 = tpu.matmul %155, %162, %cst_84 {dimension_numbers = #tpu.dot_dimension_numbers<[1], [0], [0], [1], [0, 0, 1, 1], [], []>} : vector<8x8xf32>, vector<8x8xf32>, vector<8x8xf32> -> vector<8x8xf32>
    %171 = vector.broadcast %169 : vector<1x8xf32> to vector<8x8xf32>
    %172 = arith.mulf %170, %171 : vector<8x8xf32>
    %c56_85 = arith.constant 56 : index
    %c0_86 = arith.constant 0 : index
    %173 = vector.load %arg7[%c56_85, %c0_86] : memref<128x8xf32, #tpu.memory_space<vmem>>, vector<8x8xf32>
    tpu.vector_store %arg7[%c56_85, %c0_86], %172 {strides = array<i32>} : memref<128x8xf32, #tpu.memory_space<vmem>>, vector<8x8xf32>,
    %c64 = arith.constant 64 : index
    %c0_87 = arith.constant 0 : index
    %174 = vector.load %arg6[%c64, %c0_87] : memref<384x8xf32, #tpu.memory_space<vmem>>, vector<8x8xf32>
    %c192 = arith.constant 192 : index
    %c0_88 = arith.constant 0 : index
    %175 = vector.load %arg6[%c192, %c0_88] : memref<384x8xf32, #tpu.memory_space<vmem>>, vector<8x8xf32>
    %c320 = arith.constant 320 : index
    %c0_89 = arith.constant 0 : index
    %176 = vector.load %arg6[%c320, %c0_89] : memref<384x8xf32, #tpu.memory_space<vmem>>, vector<8x8xf32>
    %177 = tpu.transpose %175, [1, 0] : vector<8x8xf32> -> vector<8x8xf32>
    %cst_90 = arith.constant dense<0.000000e+00> : vector<8x8xf32>
    %178 = tpu.matmul %177, %174, %cst_90 {dimension_numbers = #tpu.dot_dimension_numbers<[1], [0], [0], [1], [0, 0, 1, 1], [], []>} : vector<8x8xf32>, vector<8x8xf32>, vector<8x8xf32> -> vector<8x8xf32>
    %cst_91 = arith.constant dense<0xFF800000> : vector<8xf32>
    %179 = vector.multi_reduction <maximumf>, %178, %cst_91 [0] : vector<8x8xf32> to vector<8xf32>
    %180 = vector.shape_cast %179 : vector<8xf32> to vector<1x8xf32>
    %181 = vector.broadcast %180 : vector<1x8xf32> to vector<8x8xf32>
    %182 = arith.subf %178, %181 : vector<8x8xf32>
    %183 = math.exp %182 : vector<8x8xf32>
    %cst_92 = arith.constant dense<0.000000e+00> : vector<8xf32>
    %184 = vector.multi_reduction <add>, %183, %cst_92 [0] : vector<8x8xf32> to vector<8xf32>
    %185 = vector.shape_cast %184 : vector<8xf32> to vector<1x8xf32>
    %186 = tpu.reciprocal %185 {approx = true} : vector<1x8xf32> -> vector<1x8xf32>
    %187 = arith.mulf %185, %186 : vector<1x8xf32>
    %cst_93 = arith.constant 2.000000e+00 : f32
    %188 = vector.broadcast %cst_93 : f32 to vector<1x8xf32>
    %189 = arith.subf %188, %187 : vector<1x8xf32>
    %190 = arith.mulf %186, %189 : vector<1x8xf32>
    %cst_94 = arith.constant dense<0.000000e+00> : vector<8x8xf32>
    %191 = tpu.matmul %176, %183, %cst_94 {dimension_numbers = #tpu.dot_dimension_numbers<[1], [0], [0], [1], [0, 0, 1, 1], [], []>} : vector<8x8xf32>, vector<8x8xf32>, vector<8x8xf32> -> vector<8x8xf32>
    %192 = vector.broadcast %190 : vector<1x8xf32> to vector<8x8xf32>
    %193 = arith.mulf %191, %192 : vector<8x8xf32>
    %c64_95 = arith.constant 64 : index
    %c0_96 = arith.constant 0 : index
    %194 = vector.load %arg7[%c64_95, %c0_96] : memref<128x8xf32, #tpu.memory_space<vmem>>, vector<8x8xf32>
    tpu.vector_store %arg7[%c64_95, %c0_96], %193 {strides = array<i32>} : memref<128x8xf32, #tpu.memory_space<vmem>>, vector<8x8xf32>,
    %c72 = arith.constant 72 : index
    %c0_97 = arith.constant 0 : index
    %195 = vector.load %arg6[%c72, %c0_97] : memref<384x8xf32, #tpu.memory_space<vmem>>, vector<8x8xf32>
    %c200 = arith.constant 200 : index
    %c0_98 = arith.constant 0 : index
    %196 = vector.load %arg6[%c200, %c0_98] : memref<384x8xf32, #tpu.memory_space<vmem>>, vector<8x8xf32>
    %c328 = arith.constant 328 : index
    %c0_99 = arith.constant 0 : index
    %197 = vector.load %arg6[%c328, %c0_99] : memref<384x8xf32, #tpu.memory_space<vmem>>, vector<8x8xf32>
    %198 = tpu.transpose %196, [1, 0] : vector<8x8xf32> -> vector<8x8xf32>
    %cst_100 = arith.constant dense<0.000000e+00> : vector<8x8xf32>
    %199 = tpu.matmul %198, %195, %cst_100 {dimension_numbers = #tpu.dot_dimension_numbers<[1], [0], [0], [1], [0, 0, 1, 1], [], []>} : vector<8x8xf32>, vector<8x8xf32>, vector<8x8xf32> -> vector<8x8xf32>
    %cst_101 = arith.constant dense<0xFF800000> : vector<8xf32>
    %200 = vector.multi_reduction <maximumf>, %199, %cst_101 [0] : vector<8x8xf32> to vector<8xf32>
    %201 = vector.shape_cast %200 : vector<8xf32> to vector<1x8xf32>
    %202 = vector.broadcast %201 : vector<1x8xf32> to vector<8x8xf32>
    %203 = arith.subf %199, %202 : vector<8x8xf32>
    %204 = math.exp %203 : vector<8x8xf32>
    %cst_102 = arith.constant dense<0.000000e+00> : vector<8xf32>
    %205 = vector.multi_reduction <add>, %204, %cst_102 [0] : vector<8x8xf32> to vector<8xf32>
    %206 = vector.shape_cast %205 : vector<8xf32> to vector<1x8xf32>
    %207 = tpu.reciprocal %206 {approx = true} : vector<1x8xf32> -> vector<1x8xf32>
    %208 = arith.mulf %206, %207 : vector<1x8xf32>
    %cst_103 = arith.constant 2.000000e+00 : f32
    %209 = vector.broadcast %cst_103 : f32 to vector<1x8xf32>
    %210 = arith.subf %209, %208 : vector<1x8xf32>
    %211 = arith.mulf %207, %210 : vector<1x8xf32>
    %cst_104 = arith.constant dense<0.000000e+00> : vector<8x8xf32>
    %212 = tpu.matmul %197, %204, %cst_104 {dimension_numbers = #tpu.dot_dimension_numbers<[1], [0], [0], [1], [0, 0, 1, 1], [], []>} : vector<8x8xf32>, vector<8x8xf32>, vector<8x8xf32> -> vector<8x8xf32>
    %213 = vector.broadcast %211 : vector<1x8xf32> to vector<8x8xf32>
    %214 = arith.mulf %212, %213 : vector<8x8xf32>
    %c72_105 = arith.constant 72 : index
    %c0_106 = arith.constant 0 : index
    %215 = vector.load %arg7[%c72_105, %c0_106] : memref<128x8xf32, #tpu.memory_space<vmem>>, vector<8x8xf32>
    tpu.vector_store %arg7[%c72_105, %c0_106], %214 {strides = array<i32>} : memref<128x8xf32, #tpu.memory_space<vmem>>, vector<8x8xf32>,
    %c80 = arith.constant 80 : index
    %c0_107 = arith.constant 0 : index
    %216 = vector.load %arg6[%c80, %c0_107] : memref<384x8xf32, #tpu.memory_space<vmem>>, vector<8x8xf32>
    %c208 = arith.constant 208 : index
    %c0_108 = arith.constant 0 : index
    %217 = vector.load %arg6[%c208, %c0_108] : memref<384x8xf32, #tpu.memory_space<vmem>>, vector<8x8xf32>
    %c336 = arith.constant 336 : index
    %c0_109 = arith.constant 0 : index
    %218 = vector.load %arg6[%c336, %c0_109] : memref<384x8xf32, #tpu.memory_space<vmem>>, vector<8x8xf32>
    %219 = tpu.transpose %217, [1, 0] : vector<8x8xf32> -> vector<8x8xf32>
    %cst_110 = arith.constant dense<0.000000e+00> : vector<8x8xf32>
    %220 = tpu.matmul %219, %216, %cst_110 {dimension_numbers = #tpu.dot_dimension_numbers<[1], [0], [0], [1], [0, 0, 1, 1], [], []>} : vector<8x8xf32>, vector<8x8xf32>, vector<8x8xf32> -> vector<8x8xf32>
    %cst_111 = arith.constant dense<0xFF800000> : vector<8xf32>
    %221 = vector.multi_reduction <maximumf>, %220, %cst_111 [0] : vector<8x8xf32> to vector<8xf32>
    %222 = vector.shape_cast %221 : vector<8xf32> to vector<1x8xf32>
    %223 = vector.broadcast %222 : vector<1x8xf32> to vector<8x8xf32>
    %224 = arith.subf %220, %223 : vector<8x8xf32>
    %225 = math.exp %224 : vector<8x8xf32>
    %cst_112 = arith.constant dense<0.000000e+00> : vector<8xf32>
    %226 = vector.multi_reduction <add>, %225, %cst_112 [0] : vector<8x8xf32> to vector<8xf32>
    %227 = vector.shape_cast %226 : vector<8xf32> to vector<1x8xf32>
    %228 = tpu.reciprocal %227 {approx = true} : vector<1x8xf32> -> vector<1x8xf32>
    %229 = arith.mulf %227, %228 : vector<1x8xf32>
    %cst_113 = arith.constant 2.000000e+00 : f32
    %230 = vector.broadcast %cst_113 : f32 to vector<1x8xf32>
    %231 = arith.subf %230, %229 : vector<1x8xf32>
    %232 = arith.mulf %228, %231 : vector<1x8xf32>
    %cst_114 = arith.constant dense<0.000000e+00> : vector<8x8xf32>
    %233 = tpu.matmul %218, %225, %cst_114 {dimension_numbers = #tpu.dot_dimension_numbers<[1], [0], [0], [1], [0, 0, 1, 1], [], []>} : vector<8x8xf32>, vector<8x8xf32>, vector<8x8xf32> -> vector<8x8xf32>
    %234 = vector.broadcast %232 : vector<1x8xf32> to vector<8x8xf32>
    %235 = arith.mulf %233, %234 : vector<8x8xf32>
    %c80_115 = arith.constant 80 : index
    %c0_116 = arith.constant 0 : index
    %236 = vector.load %arg7[%c80_115, %c0_116] : memref<128x8xf32, #tpu.memory_space<vmem>>, vector<8x8xf32>
    tpu.vector_store %arg7[%c80_115, %c0_116], %235 {strides = array<i32>} : memref<128x8xf32, #tpu.memory_space<vmem>>, vector<8x8xf32>,
    %c88 = arith.constant 88 : index
    %c0_117 = arith.constant 0 : index
    %237 = vector.load %arg6[%c88, %c0_117] : memref<384x8xf32, #tpu.memory_space<vmem>>, vector<8x8xf32>
    %c216 = arith.constant 216 : index
    %c0_118 = arith.constant 0 : index
    %238 = vector.load %arg6[%c216, %c0_118] : memref<384x8xf32, #tpu.memory_space<vmem>>, vector<8x8xf32>
    %c344 = arith.constant 344 : index
    %c0_119 = arith.constant 0 : index
    %239 = vector.load %arg6[%c344, %c0_119] : memref<384x8xf32, #tpu.memory_space<vmem>>, vector<8x8xf32>
    %240 = tpu.transpose %238, [1, 0] : vector<8x8xf32> -> vector<8x8xf32>
    %cst_120 = arith.constant dense<0.000000e+00> : vector<8x8xf32>
    %241 = tpu.matmul %240, %237, %cst_120 {dimension_numbers = #tpu.dot_dimension_numbers<[1], [0], [0], [1], [0, 0, 1, 1], [], []>} : vector<8x8xf32>, vector<8x8xf32>, vector<8x8xf32> -> vector<8x8xf32>
    %cst_121 = arith.constant dense<0xFF800000> : vector<8xf32>
    %242 = vector.multi_reduction <maximumf>, %241, %cst_121 [0] : vector<8x8xf32> to vector<8xf32>
    %243 = vector.shape_cast %242 : vector<8xf32> to vector<1x8xf32>
    %244 = vector.broadcast %243 : vector<1x8xf32> to vector<8x8xf32>
    %245 = arith.subf %241, %244 : vector<8x8xf32>
    %246 = math.exp %245 : vector<8x8xf32>
    %cst_122 = arith.constant dense<0.000000e+00> : vector<8xf32>
    %247 = vector.multi_reduction <add>, %246, %cst_122 [0] : vector<8x8xf32> to vector<8xf32>
    %248 = vector.shape_cast %247 : vector<8xf32> to vector<1x8xf32>
    %249 = tpu.reciprocal %248 {approx = true} : vector<1x8xf32> -> vector<1x8xf32>
    %250 = arith.mulf %248, %249 : vector<1x8xf32>
    %cst_123 = arith.constant 2.000000e+00 : f32
    %251 = vector.broadcast %cst_123 : f32 to vector<1x8xf32>
    %252 = arith.subf %251, %250 : vector<1x8xf32>
    %253 = arith.mulf %249, %252 : vector<1x8xf32>
    %cst_124 = arith.constant dense<0.000000e+00> : vector<8x8xf32>
    %254 = tpu.matmul %239, %246, %cst_124 {dimension_numbers = #tpu.dot_dimension_numbers<[1], [0], [0], [1], [0, 0, 1, 1], [], []>} : vector<8x8xf32>, vector<8x8xf32>, vector<8x8xf32> -> vector<8x8xf32>
    %255 = vector.broadcast %253 : vector<1x8xf32> to vector<8x8xf32>
    %256 = arith.mulf %254, %255 : vector<8x8xf32>
    %c88_125 = arith.constant 88 : index
    %c0_126 = arith.constant 0 : index
    %257 = vector.load %arg7[%c88_125, %c0_126] : memref<128x8xf32, #tpu.memory_space<vmem>>, vector<8x8xf32>
    tpu.vector_store %arg7[%c88_125, %c0_126], %256 {strides = array<i32>} : memref<128x8xf32, #tpu.memory_space<vmem>>, vector<8x8xf32>,
    %c96 = arith.constant 96 : index
    %c0_127 = arith.constant 0 : index
    %258 = vector.load %arg6[%c96, %c0_127] : memref<384x8xf32, #tpu.memory_space<vmem>>, vector<8x8xf32>
    %c224 = arith.constant 224 : index
    %c0_128 = arith.constant 0 : index
    %259 = vector.load %arg6[%c224, %c0_128] : memref<384x8xf32, #tpu.memory_space<vmem>>, vector<8x8xf32>
    %c352 = arith.constant 352 : index
    %c0_129 = arith.constant 0 : index
    %260 = vector.load %arg6[%c352, %c0_129] : memref<384x8xf32, #tpu.memory_space<vmem>>, vector<8x8xf32>
    %261 = tpu.transpose %259, [1, 0] : vector<8x8xf32> -> vector<8x8xf32>
    %cst_130 = arith.constant dense<0.000000e+00> : vector<8x8xf32>
    %262 = tpu.matmul %261, %258, %cst_130 {dimension_numbers = #tpu.dot_dimension_numbers<[1], [0], [0], [1], [0, 0, 1, 1], [], []>} : vector<8x8xf32>, vector<8x8xf32>, vector<8x8xf32> -> vector<8x8xf32>
    %cst_131 = arith.constant dense<0xFF800000> : vector<8xf32>
    %263 = vector.multi_reduction <maximumf>, %262, %cst_131 [0] : vector<8x8xf32> to vector<8xf32>
    %264 = vector.shape_cast %263 : vector<8xf32> to vector<1x8xf32>
    %265 = vector.broadcast %264 : vector<1x8xf32> to vector<8x8xf32>
    %266 = arith.subf %262, %265 : vector<8x8xf32>
    %267 = math.exp %266 : vector<8x8xf32>
    %cst_132 = arith.constant dense<0.000000e+00> : vector<8xf32>
    %268 = vector.multi_reduction <add>, %267, %cst_132 [0] : vector<8x8xf32> to vector<8xf32>
    %269 = vector.shape_cast %268 : vector<8xf32> to vector<1x8xf32>
    %270 = tpu.reciprocal %269 {approx = true} : vector<1x8xf32> -> vector<1x8xf32>
    %271 = arith.mulf %269, %270 : vector<1x8xf32>
    %cst_133 = arith.constant 2.000000e+00 : f32
    %272 = vector.broadcast %cst_133 : f32 to vector<1x8xf32>
    %273 = arith.subf %272, %271 : vector<1x8xf32>
    %274 = arith.mulf %270, %273 : vector<1x8xf32>
    %cst_134 = arith.constant dense<0.000000e+00> : vector<8x8xf32>
    %275 = tpu.matmul %260, %267, %cst_134 {dimension_numbers = #tpu.dot_dimension_numbers<[1], [0], [0], [1], [0, 0, 1, 1], [], []>} : vector<8x8xf32>, vector<8x8xf32>, vector<8x8xf32> -> vector<8x8xf32>
    %276 = vector.broadcast %274 : vector<1x8xf32> to vector<8x8xf32>
    %277 = arith.mulf %275, %276 : vector<8x8xf32>
    %c96_135 = arith.constant 96 : index
    %c0_136 = arith.constant 0 : index
    %278 = vector.load %arg7[%c96_135, %c0_136] : memref<128x8xf32, #tpu.memory_space<vmem>>, vector<8x8xf32>
    tpu.vector_store %arg7[%c96_135, %c0_136], %277 {strides = array<i32>} : memref<128x8xf32, #tpu.memory_space<vmem>>, vector<8x8xf32>,
    %c104 = arith.constant 104 : index
    %c0_137 = arith.constant 0 : index
    %279 = vector.load %arg6[%c104, %c0_137] : memref<384x8xf32, #tpu.memory_space<vmem>>, vector<8x8xf32>
    %c232 = arith.constant 232 : index
    %c0_138 = arith.constant 0 : index
    %280 = vector.load %arg6[%c232, %c0_138] : memref<384x8xf32, #tpu.memory_space<vmem>>, vector<8x8xf32>
    %c360 = arith.constant 360 : index
    %c0_139 = arith.constant 0 : index
    %281 = vector.load %arg6[%c360, %c0_139] : memref<384x8xf32, #tpu.memory_space<vmem>>, vector<8x8xf32>
    %282 = tpu.transpose %280, [1, 0] : vector<8x8xf32> -> vector<8x8xf32>
    %cst_140 = arith.constant dense<0.000000e+00> : vector<8x8xf32>
    %283 = tpu.matmul %282, %279, %cst_140 {dimension_numbers = #tpu.dot_dimension_numbers<[1], [0], [0], [1], [0, 0, 1, 1], [], []>} : vector<8x8xf32>, vector<8x8xf32>, vector<8x8xf32> -> vector<8x8xf32>
    %cst_141 = arith.constant dense<0xFF800000> : vector<8xf32>
    %284 = vector.multi_reduction <maximumf>, %283, %cst_141 [0] : vector<8x8xf32> to vector<8xf32>
    %285 = vector.shape_cast %284 : vector<8xf32> to vector<1x8xf32>
    %286 = vector.broadcast %285 : vector<1x8xf32> to vector<8x8xf32>
    %287 = arith.subf %283, %286 : vector<8x8xf32>
    %288 = math.exp %287 : vector<8x8xf32>
    %cst_142 = arith.constant dense<0.000000e+00> : vector<8xf32>
    %289 = vector.multi_reduction <add>, %288, %cst_142 [0] : vector<8x8xf32> to vector<8xf32>
    %290 = vector.shape_cast %289 : vector<8xf32> to vector<1x8xf32>
    %291 = tpu.reciprocal %290 {approx = true} : vector<1x8xf32> -> vector<1x8xf32>
    %292 = arith.mulf %290, %291 : vector<1x8xf32>
    %cst_143 = arith.constant 2.000000e+00 : f32
    %293 = vector.broadcast %cst_143 : f32 to vector<1x8xf32>
    %294 = arith.subf %293, %292 : vector<1x8xf32>
    %295 = arith.mulf %291, %294 : vector<1x8xf32>
    %cst_144 = arith.constant dense<0.000000e+00> : vector<8x8xf32>
    %296 = tpu.matmul %281, %288, %cst_144 {dimension_numbers = #tpu.dot_dimension_numbers<[1], [0], [0], [1], [0, 0, 1, 1], [], []>} : vector<8x8xf32>, vector<8x8xf32>, vector<8x8xf32> -> vector<8x8xf32>
    %297 = vector.broadcast %295 : vector<1x8xf32> to vector<8x8xf32>
    %298 = arith.mulf %296, %297 : vector<8x8xf32>
    %c104_145 = arith.constant 104 : index
    %c0_146 = arith.constant 0 : index
    %299 = vector.load %arg7[%c104_145, %c0_146] : memref<128x8xf32, #tpu.memory_space<vmem>>, vector<8x8xf32>
    tpu.vector_store %arg7[%c104_145, %c0_146], %298 {strides = array<i32>} : memref<128x8xf32, #tpu.memory_space<vmem>>, vector<8x8xf32>,
    %c112 = arith.constant 112 : index
    %c0_147 = arith.constant 0 : index
    %300 = vector.load %arg6[%c112, %c0_147] : memref<384x8xf32, #tpu.memory_space<vmem>>, vector<8x8xf32>
    %c240 = arith.constant 240 : index
    %c0_148 = arith.constant 0 : index
    %301 = vector.load %arg6[%c240, %c0_148] : memref<384x8xf32, #tpu.memory_space<vmem>>, vector<8x8xf32>
    %c368 = arith.constant 368 : index
    %c0_149 = arith.constant 0 : index
    %302 = vector.load %arg6[%c368, %c0_149] : memref<384x8xf32, #tpu.memory_space<vmem>>, vector<8x8xf32>
    %303 = tpu.transpose %301, [1, 0] : vector<8x8xf32> -> vector<8x8xf32>
    %cst_150 = arith.constant dense<0.000000e+00> : vector<8x8xf32>
    %304 = tpu.matmul %303, %300, %cst_150 {dimension_numbers = #tpu.dot_dimension_numbers<[1], [0], [0], [1], [0, 0, 1, 1], [], []>} : vector<8x8xf32>, vector<8x8xf32>, vector<8x8xf32> -> vector<8x8xf32>
    %cst_151 = arith.constant dense<0xFF800000> : vector<8xf32>
    %305 = vector.multi_reduction <maximumf>, %304, %cst_151 [0] : vector<8x8xf32> to vector<8xf32>
    %306 = vector.shape_cast %305 : vector<8xf32> to vector<1x8xf32>
    %307 = vector.broadcast %306 : vector<1x8xf32> to vector<8x8xf32>
    %308 = arith.subf %304, %307 : vector<8x8xf32>
    %309 = math.exp %308 : vector<8x8xf32>
    %cst_152 = arith.constant dense<0.000000e+00> : vector<8xf32>
    %310 = vector.multi_reduction <add>, %309, %cst_152 [0] : vector<8x8xf32> to vector<8xf32>
    %311 = vector.shape_cast %310 : vector<8xf32> to vector<1x8xf32>
    %312 = tpu.reciprocal %311 {approx = true} : vector<1x8xf32> -> vector<1x8xf32>
    %313 = arith.mulf %311, %312 : vector<1x8xf32>
    %cst_153 = arith.constant 2.000000e+00 : f32
    %314 = vector.broadcast %cst_153 : f32 to vector<1x8xf32>
    %315 = arith.subf %314, %313 : vector<1x8xf32>
    %316 = arith.mulf %312, %315 : vector<1x8xf32>
    %cst_154 = arith.constant dense<0.000000e+00> : vector<8x8xf32>
    %317 = tpu.matmul %302, %309, %cst_154 {dimension_numbers = #tpu.dot_dimension_numbers<[1], [0], [0], [1], [0, 0, 1, 1], [], []>} : vector<8x8xf32>, vector<8x8xf32>, vector<8x8xf32> -> vector<8x8xf32>
    %318 = vector.broadcast %316 : vector<1x8xf32> to vector<8x8xf32>
    %319 = arith.mulf %317, %318 : vector<8x8xf32>
    %c112_155 = arith.constant 112 : index
    %c0_156 = arith.constant 0 : index
    %320 = vector.load %arg7[%c112_155, %c0_156] : memref<128x8xf32, #tpu.memory_space<vmem>>, vector<8x8xf32>
    tpu.vector_store %arg7[%c112_155, %c0_156], %319 {strides = array<i32>} : memref<128x8xf32, #tpu.memory_space<vmem>>, vector<8x8xf32>,
    %c120 = arith.constant 120 : index
    %c0_157 = arith.constant 0 : index
    %321 = vector.load %arg6[%c120, %c0_157] : memref<384x8xf32, #tpu.memory_space<vmem>>, vector<8x8xf32>
    %c248 = arith.constant 248 : index
    %c0_158 = arith.constant 0 : index
    %322 = vector.load %arg6[%c248, %c0_158] : memref<384x8xf32, #tpu.memory_space<vmem>>, vector<8x8xf32>
    %c376 = arith.constant 376 : index
    %c0_159 = arith.constant 0 : index
    %323 = vector.load %arg6[%c376, %c0_159] : memref<384x8xf32, #tpu.memory_space<vmem>>, vector<8x8xf32>
    %324 = tpu.transpose %322, [1, 0] : vector<8x8xf32> -> vector<8x8xf32>
    %cst_160 = arith.constant dense<0.000000e+00> : vector<8x8xf32>
    %325 = tpu.matmul %324, %321, %cst_160 {dimension_numbers = #tpu.dot_dimension_numbers<[1], [0], [0], [1], [0, 0, 1, 1], [], []>} : vector<8x8xf32>, vector<8x8xf32>, vector<8x8xf32> -> vector<8x8xf32>
    %cst_161 = arith.constant dense<0xFF800000> : vector<8xf32>
    %326 = vector.multi_reduction <maximumf>, %325, %cst_161 [0] : vector<8x8xf32> to vector<8xf32>
    %327 = vector.shape_cast %326 : vector<8xf32> to vector<1x8xf32>
    %328 = vector.broadcast %327 : vector<1x8xf32> to vector<8x8xf32>
    %329 = arith.subf %325, %328 : vector<8x8xf32>
    %330 = math.exp %329 : vector<8x8xf32>
    %cst_162 = arith.constant dense<0.000000e+00> : vector<8xf32>
    %331 = vector.multi_reduction <add>, %330, %cst_162 [0] : vector<8x8xf32> to vector<8xf32>
    %332 = vector.shape_cast %331 : vector<8xf32> to vector<1x8xf32>
    %333 = tpu.reciprocal %332 {approx = true} : vector<1x8xf32> -> vector<1x8xf32>
    %334 = arith.mulf %332, %333 : vector<1x8xf32>
    %cst_163 = arith.constant 2.000000e+00 : f32
    %335 = vector.broadcast %cst_163 : f32 to vector<1x8xf32>
    %336 = arith.subf %335, %334 : vector<1x8xf32>
    %337 = arith.mulf %333, %336 : vector<1x8xf32>
    %cst_164 = arith.constant dense<0.000000e+00> : vector<8x8xf32>
    %338 = tpu.matmul %323, %330, %cst_164 {dimension_numbers = #tpu.dot_dimension_numbers<[1], [0], [0], [1], [0, 0, 1, 1], [], []>} : vector<8x8xf32>, vector<8x8xf32>, vector<8x8xf32> -> vector<8x8xf32>
    %339 = vector.broadcast %337 : vector<1x8xf32> to vector<8x8xf32>
    %340 = arith.mulf %338, %339 : vector<8x8xf32>
    %c120_165 = arith.constant 120 : index
    %c0_166 = arith.constant 0 : index
    %341 = vector.load %arg7[%c120_165, %c0_166] : memref<128x8xf32, #tpu.memory_space<vmem>>, vector<8x8xf32>
    tpu.vector_store %arg7[%c120_165, %c0_166], %340 {strides = array<i32>} : memref<128x8xf32, #tpu.memory_space<vmem>>, vector<8x8xf32>,
    %c0_167 = arith.constant 0 : index
    %c0_168 = arith.constant 0 : index
    %342 = vector.load %arg7[%c0_167, %c0_168] : memref<128x8xf32, #tpu.memory_space<vmem>>, vector<128x8xf32>
    %343 = tpu.transpose %342, [1, 0] : vector<128x8xf32> -> vector<8x128xf32>
    %344 = arith.truncf %343 : vector<8x128xf32> to vector<8x128xbf16>
    %c0_169 = arith.constant 0 : index
    %c0_170 = arith.constant 0 : index
    %345 = vector.load %arg3[%c0_169, %c0_170] : memref<128x128xbf16, #tpu.memory_space<vmem>>, vector<128x128xbf16>
    %cst_171 = arith.constant dense<0.000000e+00> : vector<8x128xf32>
    %346 = tpu.matmul %344, %345, %cst_171 {dimension_numbers = #tpu.dot_dimension_numbers<[1], [0], [0], [1], [0, 0, 1, 1], [], []>} : vector<8x128xbf16>, vector<128x128xbf16>, vector<8x128xf32> -> vector<8x128xf32>
    %c0_172 = arith.constant 0 : index
    %c0_173 = arith.constant 0 : index
    %347 = vector.load %arg4[%c0_172, %c0_173] : memref<1x128xf32, #tpu.memory_space<vmem>>, vector<1x128xf32>
    %348 = vector.broadcast %347 : vector<1x128xf32> to vector<8x128xf32>
    %349 = arith.addf %346, %348 : vector<8x128xf32>
    %c0_174 = arith.constant 0 : index
    %c0_175 = arith.constant 0 : index
    %c0_176 = arith.constant 0 : index
    %350 = vector.load %arg5[%c0_174, %c0_175, %c0_176] : memref<1x8x128xf32, #tpu.memory_space<vmem>>, vector<1x8x128xf32>
    %351 = vector.shape_cast %350 : vector<1x8x128xf32> to vector<8x128xf32>
    %352 = vector.shape_cast %349 : vector<8x128xf32> to vector<1x8x128xf32>
    tpu.vector_store %arg5[%c0_174, %c0_175, %c0_176], %352 {strides = array<i32>} : memref<1x8x128xf32, #tpu.memory_space<vmem>>, vector<1x8x128xf32>,
    return
  }
  func.func @transform_0(%arg0: i32) -> (i32, i32, i32) {
    %c0_i32 = arith.constant 0 : i32
    %c0_i32_0 = arith.constant 0 : i32
    %c0_i32_1 = arith.constant 0 : i32
    return %arg0, %c0_i32, %c0_i32_0 : i32, i32, i32
  }
  func.func @transform_1(%arg0: i32) -> (i32, i32) {
    %c0_i32 = arith.constant 0 : i32
    %c0_i32_0 = arith.constant 0 : i32
    %c0_i32_1 = arith.constant 0 : i32
    return %c0_i32, %c0_i32_0 : i32, i32
  }
  func.func @transform_2(%arg0: i32) -> (i32, i32) {
    %c0_i32 = arith.constant 0 : i32
    %c0_i32_0 = arith.constant 0 : i32
    %c0_i32_1 = arith.constant 0 : i32
    return %c0_i32, %c0_i32_0 : i32, i32
  }
  func.func @transform_3(%arg0: i32) -> (i32, i32) {
    %c0_i32 = arith.constant 0 : i32
    %c0_i32_0 = arith.constant 0 : i32
    %c0_i32_1 = arith.constant 0 : i32
    return %c0_i32, %c0_i32_0 : i32, i32
  }
  func.func @transform_4(%arg0: i32) -> (i32, i32, i32) {
    %c0_i32 = arith.constant 0 : i32
    %c0_i32_0 = arith.constant 0 : i32
    %c0_i32_1 = arith.constant 0 : i32
    return %arg0, %c0_i32, %c0_i32_0 : i32, i32, i32
  }
}

</mosaic_0001>

<bundles_post_ra>
// kernel: tpu_custom_call.1
= control target key start
LH: loop header
LB: loop body
LE: loop exit
PB: predicated region body
PF: predicated region fallthrough
CT: control target
= control target key end

     0   :  { %9 = vsyncpa [#allocation5], 0  ;;  %s5437_s0 = inlined_call_operand.hbm [shape: f32[2,8,128], index: 0, kind: input, shape index: {}]   ;;  %s5438_s1 = inlined_call_operand.hbm [shape: bf16[384,128], index: 1, kind: input, shape index: {}]   ;;  %s5439_s2 = inlined_call_operand.hbm [shape: bf16[128,128], index: 2, kind: input, shape index: {}]   ;;  %s5440_s3 = inlined_call_operand.vmem [shape: f32[1,128], index: 3, kind: input, shape index: {}]   ;;  %s5441_s4 = inlined_call_operand.hbm [shape: f32[2,8,128], index: 4, kind: output, shape index: {}]  }
   0x1   :  { %11 = vsyncpa [#allocation5 + $0x1], 0 }
   0x2   :  { %12 = vsyncpa [#allocation8], 0 }
   0x3   :  { %13 = vsyncpa [#allocation6], 0 }
   0x4   :  { %15 = vsyncpa [#allocation6 + $0x1], 0  ;;  %s5000_s15 = smov 0   ;;  %s5002_s16 = smov 0  }
   0x5   :  { %s5004_s17 = smov 0   ;;  %s5006_s18 = smov 0  }
   0x6 LB: > { %s5021_s19 = sadd.s32 4294967295, %s4965_s18   ;;  %s4239_s20 = sadd.s32 4294967294, %s4965_s18   ;;  %s4965_s18 = sphi %s5006_s18, %s5463_s18   ;;  %s4961_s17 = sphi %s5004_s17, %s5462_s17   ;;  %s4957_s16 = sphi %s5002_s16, %s5461_s16   ;;  %s4953_s15 = sphi %s5000_s15, %s5460_s15  }
   0x7   : > { %p41_p0 = scmp.ne.s32.totalorder %s4957_s16, %s4953_s15  ;;  %p5442_p1 = scmp.eq.s32.totalorder %s5021_s19, 0 }
   0x8   : > { %p134_p3 = scmp.eq.s32.totalorder %s4239_s20, 1  ;;  %p4240_p5 = scmp.ge.s32.totalorder %s4965_s18, 1 }
   0x9   : > { %p5030_p4 = por %p5442_p1, %p41_p0  ;;  %p141_p7 = scmp.lt.s32.totalorder %s4965_s18, 3 }
   0xa   : > { %p5035_p6 = por %p134_p3, %p41_p0  ;;  %s4967_s24 = smov [#allocation7]  }
   0xb   : > { %s5446_s21 = scalar_select %p5030_p4, 1, 0 }
   0xc   : > { %s5447_s22 = scalar_select %p5035_p6, 1, 0 }
   0xd   : > { %p5040_p8 = pnand %p4240_p5, %p141_p7  ;;  %s153_s25 = sshll.u32 %s4967_s24, 4  ;;  %s154_s25 = int_to_ptr.vmem [resolvable:$true] %s153_s25 }
   0xe   : > { %s4968_s27 = smov [#allocation9]   ;;  %s4828_s29 = scalar_lea.vmem %s154_s25, 3072 }
   0xf   : > { %s5448_s23 = scalar_select %p5040_p8, 1, 0 }
  0x10   : > { %p4662_p9 = pneg %p5040_p8  ;;  %s166_s28 = sshll.u32 %s4968_s27, 4  ;;  %s167_s28 = int_to_ptr.vmem [resolvable:$true] %s166_s28 }
  0x11   : > { %p4829_p13 = scmp.ne.s32.totalorder %s154_s25, %s4828_s29  ;;  %p4836_p5 = scmp.lt.s32.totalorder %s154_s25, %s154_s25 }
  0x12   : > { %p5049_p11 = pnand %p4662_p9, %p5442_p1  ;;  %p4837_p7 = scmp.lt.s32.totalorder %s4828_s29, %s4828_s29 }
  0x14   : > { %p4819_p12 = pneg %p5049_p11  ;;  %p4838_p10 = por %p4837_p7, %p4836_p5 }
  0x16   : > { %p4831_p0 = pnand %p4829_p13, %p4819_p12 }
  0x18   : > { %p4832_p3 = pneg %p4831_p0 }
  0x1a   : > { %p4839_p9 = pnand %p4838_p10, %p4832_p3 }
  0x1c   : > { %4842 = shalt.err (!%p4839_p9)
}
  0x1d   : > { %s4969_s30 = smov 64   ;;  %s4970_s5 = smov 4  }
  0x1e   : > { %4665 = dma.hbm_to_vmem [thread:$0]  (!%p5049_p11), %s5438_s1, 3072, %s154_s25, [#allocation8], %s4969_s30, %s4969_s30, %s4970_s5  }
  0x1f   : > { %s4854_s8 = scalar_lea.vmem %s167_s28, 1024  ;;  %p4862_p2 = scmp.lt.s32.totalorder %s167_s28, %s167_s28 }
  0x20   : > { %p4855_p1 = scmp.ne.s32.totalorder %s167_s28, %s4854_s8  ;;  %p4863_p6 = scmp.lt.s32.totalorder %s4854_s8, %s4854_s8 }
  0x22   : > { %p4857_p13 = pnand %p4855_p1, %p4819_p12  ;;  %p4864_p5 = por %p4863_p6, %p4862_p2 }
  0x24   : > { %p4858_p0 = pneg %p4857_p13 }
  0x26   : > { %p4865_p10 = pnand %p4864_p5, %p4858_p0 }
  0x28   : > { %4868 = shalt.err (!%p4865_p10)
}
  0x29   : > { %4668 = dma.hbm_to_vmem [thread:$0]  (!%p5049_p11), %s5439_s2, 1024, %s167_s28, [#allocation8], %s4969_s30, %s4969_s30, %s4970_s5  }
  0x2a   : > { %s5072_s11 = sadd.s32 1, %s4965_s18   ;;  %s28_s12 = sadd.s32 1, %s4961_s17 }
  0x2b   : > { %s25_s13 = ssub.s32 %s4965_s18, %s5072_s11  ;;  %p35_p1 = scmp.ne.s32.totalorder %s4961_s17, %s4957_s16 }
  0x2c   : > { %p26_p2 = scmp.eq.s32.totalorder %s25_s13, 0  ;;  %p36_p6 = scmp.eq.s32.totalorder %s4965_s18, 0 }
  0x2d   : > { %p5450_p12 = scmp.eq.s32.totalorder %s5021_s19, 1  ;;  %p4679_p7 = scmp.lt.s32.totalorder %s4965_s18, 2 }
  0x2e   : > { %s5088_s20 = scalar_select %p26_p2, %s4961_s17, %s28_s12  }
  0x2f   : > { %p5082_p3 = por %p5450_p12, %p35_p1  ;;  %p37_p9 = por %p36_p6, %p35_p1 }
  0x30   : > { %s183_s24 = sand.u32 1, %s4961_s17   ;;  %s4245_s26 = sshll.u32 %s4965_s18, 7 }
  0x31   : > { %s5451_s14 = scalar_select %p5082_p3, 1, 0 }
  0x32   : > { %s4244_s25 = sshll.u32 %s183_s24, 3  ;;  %s5095_s29 = scalar_lea.hbm %s5437_s0, %s4245_s26 }
  0x33   : > { %s187_s30 = scalar_lea.vmem [#allocation4], %s4244_s25  ;;  %p5097_p11 = pnand %p4679_p7, %p37_p9 }
  0x34   : > { %s194_s5 = sshll.u32 %s187_s30, 4  ;;  %s184_s7 = scalar_lea.sflag [#allocation5], %s183_s24  ;;  %s195_s5 = int_to_ptr.vmem [resolvable:$true] %s194_s5 }
  0x35   : > { %s4869_s8 = scalar_lea.hbm %s5095_s29, 128  ;;  %p4871_p0 = pneg %p5097_p11 }
  0x36   : > { %p4870_p13 = scmp.ne.s32.totalorder %s5095_s29, %s4869_s8  ;;  %s4874_s12 = scalar_lea.hbm %s5437_s0, 256 }
  0x37   : > { %p4875_p1 = scmp.lt.s32.totalorder %s5095_s29, %s5437_s0  ;;  %p4876_p2 = scmp.lt.s32.totalorder %s4874_s12, %s4869_s8 }
  0x38   : > { %p4872_p5 = pnand %p4871_p0, %p4870_p13 }
  0x39   : > { %p4877_p6 = por %p4876_p2, %p4875_p1 }
  0x3a   : > { %p4873_p10 = pneg %p4872_p5 }
  0x3c   : > { %p4878_p12 = pnand %p4877_p6, %p4873_p10 }
  0x3e   : > { %4881 = shalt.err (!%p4878_p12)
}
  0x3f   : > { %s4882_s26 = scalar_lea.vmem %s195_s5, 128  ;;  %s4971_s24 = smov [#allocation4]  }
  0x40   : > { %p4883_p7 = scmp.ne.s32.totalorder %s195_s5, %s4882_s26  ;;  %s4887_s27 = sshll.u32 %s4971_s24, 4  ;;  %s4888_s27 = int_to_ptr.vmem [resolvable:$false] %s4887_s27 }
  0x41   : > { %s4889_s28 = scalar_lea.vmem %s4888_s27, 256  ;;  %p4890_p13 = scmp.lt.s32.totalorder %s195_s5, %s4888_s27 }
  0x42   : > { %p4885_p9 = pnand %p4883_p7, %p4871_p0  ;;  %p4891_p5 = scmp.lt.s32.totalorder %s4889_s28, %s4882_s26 }
  0x44   : > { %p4886_p3 = pneg %p4885_p9  ;;  %p4892_p4 = por %p4891_p5, %p4890_p13 }
  0x46   : > { %p4893_p8 = pnand %p4892_p4, %p4886_p3 }
  0x48   : > { %4896 = shalt.err (!%p4893_p8)
}
  0x49   : > { %4672 = dma.hbm_to_vmem [thread:$0]  (!%p5097_p11), %s5095_s29, 128, %s195_s5, %s184_s7  }
  0x4a   : > { %p5453_p10 = scmp.ne.s32.totalorder %s5448_s23, 0 }
  0x4b   : > { %s5118_s30 = sand.u32 (!%p5453_p10), 1, %s4957_s16   ;;  %p5454_p4 = scmp.ne.s32.totalorder (!%p5453_p10), %s5446_s21, 0 }
  0x4c   : > { %203 = sbr.rel (%p5453_p10) target bundleno = 4145 (0x1031), region = 36  ;;  %s4247_s8 = sshll.u32 (!%p5453_p10), %s5118_s30, 3 }
  0x4d   : > { %s206_s9 = scalar_lea.sflag (!%p5453_p10), [#allocation5], %s5118_s30  ;;  %s209_s10 = scalar_lea.vmem (!%p5453_p10), [#allocation4], %s4247_s8 }
  0x51   : > { %4940 = dma.done.wait (%p5454_p4), %s206_s9, 128  }
  0x52   : > { %4942 = vsyncadd (%p5454_p4), %s206_s9, 4294967168  ;;  %p5455_p8 = scmp.eq.s32.totalorder %s5021_s19, 0 }
  0x54   : > { %4944 = dma.done.wait (%p5455_p8), [#allocation8], 4096   ;;  %p5456_p3 = pmov %p5455_p8 }
  0x55   : > { %v243_v0 = vld [vmem:[%s209_s10] sm:$0xff]  ;;  %v4721_v2 = vld [vmem:[#allocation7] sm:$0xff]   ;;  %v4722_v3 = vld [vmem:[#allocation7 + $0x8] sm:$0xff]   ;;  %v4972_v20 = vmov 0.0   ;;  %vm4973_vm0 = vmmov 0   ;;  %vm662_vm1 = vcmask 64512  }
  0x56   : > { %4946 = vsyncadd (%p5456_p3), [#allocation8], 4294963200  ;;  %v244_v1 = vpack.c.bf16 %v243_v0, %v243_v0  ;;  %4420 = vmatprep.mubr.bf16.mxu0 %v4721_v2  ;;  %v4723_v4 = vld [vmem:[#allocation7 + $0x10] sm:$0xff]   ;;  %v4724_v5 = vld [vmem:[#allocation7 + $0x18] sm:$0xff]   ;;  %s4317_s29 = sshll.u32 %s5021_s19, 7  ;;  %s241_s5 = scalar_lea.vmem [#allocation10], %s4247_s8 }
  0x57   : > { %v4725_v6 = vld [vmem:[#allocation7 + $0x20] sm:$0xff]   ;;  %v4726_v7 = vld [vmem:[#allocation7 + $0x28] sm:$0xff]   ;;  %v4727_v8 = vld [vmem:[#allocation7 + $0x30] sm:$0xff]   ;;  %s4150_s6 = sshll.u32 %s241_s5, 4  ;;  %s5394_s13 = scalar_lea.hbm %s5441_s4, %s4317_s29  ;;  %s5396_s6 = int_to_ptr.vmem [resolvable:$true] %s4150_s6 }
  0x58   : > { %4418 = vmatprep.subr.bf16.mxu0 %v244_v1  ;;  %4648 = vmatprep.subr.bf16.mxu1 %v244_v1  ;;  %v4728_v9 = vld [vmem:[#allocation7 + $0x38] sm:$0xff]   ;;  %v4729_v10 = vld [vmem:[#allocation7 + $0x40] sm:$0xff]   ;;  %v4730_v11 = vld [vmem:[#allocation7 + $0x48] sm:$0xff]   ;;  %s4137_s25 = scalar_lea.sflag [#allocation6], %s5118_s30  ;;  %s4897_s19 = scalar_lea.vmem %s5396_s6, 128 }
  0x59   : > { %4419 = vmatpush3.bf16.xpose.msra.mxu0 %v244_v1  ;;  %4649 = vmatpush3.bf16.xpose.msra.mxu1 %v244_v1  ;;  %v4731_v12 = vld [vmem:[#allocation7 + $0x50] sm:$0xff]   ;;  %v4732_v13 = vld [vmem:[#allocation7 + $0x58] sm:$0xff]   ;;  %v4733_v14 = vld [vmem:[#allocation7 + $0x60] sm:$0xff]   ;;  %p4898_p11 = scmp.ne.s32.totalorder %s5396_s6, %s4897_s19  ;;  %p5457_p0 = scmp.ne.s32.totalorder %s5451_s14, 0 }
  0x5a   : > { %v4734_v15 = vld [vmem:[#allocation7 + $0x68] sm:$0xff]   ;;  %v4735_v16 = vld [vmem:[#allocation7 + $0x70] sm:$0xff]   ;;  %v4736_v17 = vld [vmem:[#allocation7 + $0x78] sm:$0xff]   ;;  %4468 = vmatprep.subr.mxu1 %v4972_v20  ;;  %4608 = vmatprep.subr.mxu0 %v4972_v20  ;;  %s4974_s26 = smov [#allocation10]  }
  0x5b   : > { %v4737_v18 = vld [vmem:[#allocation7 + $0xb0] sm:$0xff]   ;;  %v4738_v19 = vld [vmem:[#allocation7 + $0xb8] sm:$0xff]   ;;  %v4739_v45 = vld [vmem:[#allocation7 + $0x80] sm:$0xff]   ;;  %p4899_p1 = pnand %p4898_p11, %p5457_p0  ;;  %s4901_s24 = sshll.u32 %s4974_s26, 4  ;;  %s4902_s24 = int_to_ptr.vmem [resolvable:$false] %s4901_s24 }
  0x5c   : > { %4464 = vmatprep.mubr.bf16.mxu1 %v4737_v18  ;;  %v4740_v48 = vld [vmem:[#allocation7 + $0x88] sm:$0xff]   ;;  %v4741_v53 = vld [vmem:[#allocation7 + $0x90] sm:$0xff]   ;;  %v4742_v57 = vld [vmem:[#allocation7 + $0x98] sm:$0xff]   ;;  %s4903_s27 = scalar_lea.vmem %s4902_s24, 256  ;;  %p4904_p6 = scmp.lt.s32.totalorder %s5396_s6, %s4902_s24 }
  0x5d   : > { %v4743_v61 = vld [vmem:[#allocation7 + $0xa0] sm:$0xff]   ;;  %v4744_v1 = vld [vmem:[#allocation7 + $0xa8] sm:$0xff]   ;;  %p4900_p2 = pneg %p4899_p1  ;;  %p4905_p12 = scmp.lt.s32.totalorder %s4903_s27, %s4897_s19 }
  0x5f   : > { %p4906_p7 = por %p4905_p12, %p4904_p6 }
  0x60   : > { %4421 = vmatmul.mubr.bf16.vlgmr.msra.gmra.mxu0 %v4722_v3  ;;  %4465 = vmatmul.mubr.bf16.vlgmr.msra.gmra.mxu1 %v4738_v19 }
  0x61   : > { %4424 = vmatprep.mubr.bf16.mxu0 %v4723_v4  ;;  %4470 = vmatprep.mubr.msk.f32.mxu1 %vm4973_vm0, %v4972_v20  ;;  %p4907_p9 = pnand %p4906_p7, %p4900_p2 }
  0x68   : > { %4425 = vmatmul.mubr.bf16.gmra.mxu0 %v4724_v5 }
  0x69   : > { %4428 = vmatprep.mubr.bf16.mxu0 %v4725_v6 }
  0x70   : > { %4429 = vmatmul.mubr.bf16.gmra.mxu0 %v4726_v7 }
  0x71   : > { %4432 = vmatprep.mubr.bf16.mxu0 %v4727_v8 }
  0x78   : > { %4433 = vmatmul.mubr.bf16.gmra.mxu0 %v4728_v9 }
  0x79   : > { %4436 = vmatprep.mubr.bf16.mxu0 %v4729_v10 }
  0x80   : > { %4437 = vmatmul.mubr.bf16.gmra.mxu0 %v4730_v11 }
  0x81   : > { %4440 = vmatprep.mubr.bf16.mxu0 %v4731_v12 }
  0x88   : > { %4441 = vmatmul.mubr.bf16.gmra.mxu0 %v4732_v13 }
  0x89   : > { %4444 = vmatprep.mubr.bf16.mxu0 %v4733_v14 }
  0x90   : > { %4445 = vmatmul.mubr.bf16.gmra.mxu0 %v4734_v15 }
  0x91   : > { %4448 = vmatprep.mubr.bf16.mxu0 %v4735_v16 }
  0x98   : > { %4449 = vmatmul.mubr.bf16.gmra.mxu0 %v4736_v17 }
  0x99   : > { %4452 = vmatprep.mubr.bf16.mxu0 %v4739_v45 }
  0xa0   : > { %4453 = vmatmul.mubr.bf16.gmra.mxu0 %v4740_v48 }
  0xa1   : > { %4456 = vmatprep.mubr.bf16.mxu0 %v4741_v53 }
  0xa8   : > { %4457 = vmatmul.mubr.bf16.gmra.mxu0 %v4742_v57 }
  0xa9   : > { %4460 = vmatprep.mubr.bf16.mxu0 %v4743_v61 }
  0xb0   : > { %4461 = vmatmul.mubr.bf16.gmra.mxu0 %v4744_v1 }
  0xb1   : > { %4610 = vmatprep.mubr.msk.f32.mxu0 %vm4973_vm0, %v4972_v20 }
 0x120   : > { %v4422_v21 = vpop.f32.mrf.mxu0  ;;  %v4466_v5 = vpop.f32.mrf.mxu1 }
 0x121   : > { %665 = vst.msk [vmem:[#allocation2 + $0x10] sm:$0xff] %vm662_vm1, %v4422_v21  ;;  %709 = vst.msk [vmem:[#allocation2 + $0x170] sm:$0xff] %vm662_vm1, %v4466_v5 }
 0x122   : > { %v471_v22 = vpop.f32.mrf.mxu0  ;;  %v647_v6 = vpop.f32.mrf.mxu1 }
 0x123   : > { %663 = vst.msk [vmem:[#allocation2] sm:$0xff] %vm662_vm1, %v471_v22  ;;  %707 = vst.msk [vmem:[#allocation2 + $0x160] sm:$0xff] %vm662_vm1, %v647_v6 }
 0x124   : > { %v4423_v23 = vpop.f32.mrf.mxu0  ;;  %v4467_v7 = vpop.f32.mrf.mxu1 }
 0x125   : > { %666 = vst.msk [vmem:[#allocation2 + $0x18] sm:$0xff] %vm662_vm1, %v4423_v23  ;;  %710 = vst.msk [vmem:[#allocation2 + $0x178] sm:$0xff] %vm662_vm1, %v4467_v7 }
 0x126   : > { %v474_v24 = vpop.f32.mrf.mxu0  ;;  %v650_v8 = vpop.f32.mrf.mxu1 }
 0x127   : > { %664 = vst.msk [vmem:[#allocation2 + $0x8] sm:$0xff] %vm662_vm1, %v474_v24  ;;  %708 = vst.msk [vmem:[#allocation2 + $0x168] sm:$0xff] %vm662_vm1, %v650_v8 }
 0x128   : > { %v4426_v25 = vpop.f32.mrf.mxu0 }
 0x129   : > { %669 = vst.msk [vmem:[#allocation2 + $0x30] sm:$0xff] %vm662_vm1, %v4426_v25 }
 0x12a   : > { %v487_v26 = vpop.f32.mrf.mxu0  ;;  %v711_v27 = vld [vmem:[#allocation2] sm:$0xff] }
 0x12b   : > { %667 = vst.msk [vmem:[#allocation2 + $0x20] sm:$0xff] %vm662_vm1, %v487_v26  ;;  %4469 = vmatpush3.msra.mxu1 %v711_v27 }
 0x12c   : > { %v4427_v28 = vpop.f32.mrf.mxu0  ;;  %4473 = vmatprep.subr.mxu1 %v4972_v20 }
 0x12d   : > { %670 = vst.msk [vmem:[#allocation2 + $0x38] sm:$0xff] %vm662_vm1, %v4427_v28 }
 0x12e   : > { %v490_v29 = vpop.f32.mrf.mxu0 }
 0x12f   : > { %668 = vst.msk [vmem:[#allocation2 + $0x28] sm:$0xff] %vm662_vm1, %v490_v29 }
 0x130   : > { %v4430_v30 = vpop.f32.mrf.mxu0 }
 0x131   : > { %673 = vst.msk [vmem:[#allocation2 + $0x50] sm:$0xff] %vm662_vm1, %v4430_v30 }
 0x132   : > { %v503_v31 = vpop.f32.mrf.mxu0 }
 0x133   : > { %671 = vst.msk [vmem:[#allocation2 + $0x40] sm:$0xff] %vm662_vm1, %v503_v31 }
 0x134   : > { %v4431_v32 = vpop.f32.mrf.mxu0 }
 0x135   : > { %674 = vst.msk [vmem:[#allocation2 + $0x58] sm:$0xff] %vm662_vm1, %v4431_v32 }
 0x136   : > { %v506_v33 = vpop.f32.mrf.mxu0 }
 0x137   : > { %672 = vst.msk [vmem:[#allocation2 + $0x48] sm:$0xff] %vm662_vm1, %v506_v33 }
 0x138   : > { %v4434_v34 = vpop.f32.mrf.mxu0 }
 0x139   : > { %677 = vst.msk [vmem:[#allocation2 + $0x70] sm:$0xff] %vm662_vm1, %v4434_v34 }
 0x13a   : > { %v519_v35 = vpop.f32.mrf.mxu0 }
 0x13b   : > { %675 = vst.msk [vmem:[#allocation2 + $0x60] sm:$0xff] %vm662_vm1, %v519_v35 }
 0x13c   : > { %v4435_v36 = vpop.f32.mrf.mxu0 }
 0x13d   : > { %678 = vst.msk [vmem:[#allocation2 + $0x78] sm:$0xff] %vm662_vm1, %v4435_v36 }
 0x13e   : > { %v522_v37 = vpop.f32.mrf.mxu0 }
 0x13f   : > { %676 = vst.msk [vmem:[#allocation2 + $0x68] sm:$0xff] %vm662_vm1, %v522_v37 }
 0x140   : > { %v4438_v38 = vpop.f32.mrf.mxu0  ;;  %v3567_v39 = vld [vmem:[#allocation2 + $0x70] sm:$0xff] }
 0x141   : > { %681 = vst.msk [vmem:[#allocation2 + $0x90] sm:$0xff] %vm662_vm1, %v4438_v38  ;;  %4609 = vmatpush3.msra.mxu0 %v3567_v39 }
 0x142   : > { %v535_v40 = vpop.f32.mrf.mxu0  ;;  %4618 = vmatprep.subr.mxu0 %v4972_v20 }
 0x143   : > { %679 = vst.msk [vmem:[#allocation2 + $0x80] sm:$0xff] %vm662_vm1, %v535_v40 }
 0x144   : > { %v4439_v41 = vpop.f32.mrf.mxu0  ;;  %v3771_v17 = vld [vmem:[#allocation2 + $0x78] sm:$0xff] }
 0x145   : > { %682 = vst.msk [vmem:[#allocation2 + $0x98] sm:$0xff] %vm662_vm1, %v4439_v41 }
 0x146   : > { %v538_v42 = vpop.f32.mrf.mxu0 }
 0x147   : > { %680 = vst.msk [vmem:[#allocation2 + $0x88] sm:$0xff] %vm662_vm1, %v538_v42 }
 0x148   : > { %v4442_v43 = vpop.f32.mrf.mxu0  ;;  %v1120_v44 = vld [vmem:[#allocation2 + $0x90] sm:$0xff] }
 0x149   : > { %685 = vst.msk [vmem:[#allocation2 + $0xb0] sm:$0xff] %vm662_vm1, %v4442_v43  ;;  %1122 = vxpose.xlu1.b32.start.end [1/1] (short) (narrow) %v1120_v44, 8  ;;  %v915_v44 = vld [vmem:[#allocation2 + $0x8] sm:$0xff] }
 0x14a   : > { %v551_v46 = vpop.f32.mrf.mxu0  ;;  %v712_v47 = vld [vmem:[#allocation2 + $0x80] sm:$0xff] }
 0x14b   : > { %683 = vst.msk [vmem:[#allocation2 + $0xa0] sm:$0xff] %vm662_vm1, %v551_v46  ;;  %714 = vxpose.xlu0.b32.start.end [1/1] (short) (narrow) %v712_v47, 8 }
 0x14c   : > { %v4443_v49 = vpop.f32.mrf.mxu0  ;;  %v1324_v50 = vld [vmem:[#allocation2 + $0x98] sm:$0xff] }
 0x14d   : > { %686 = vst.msk [vmem:[#allocation2 + $0xb8] sm:$0xff] %vm662_vm1, %v4443_v49  ;;  %1326 = vxpose.xlu1.b32.start.end [1/1] (short) (narrow) %v1324_v50, 8 }
 0x14e   : > { %v554_v51 = vpop.f32.mrf.mxu0  ;;  %v916_v52 = vld [vmem:[#allocation2 + $0x88] sm:$0xff] }
 0x14f   : > { %684 = vst.msk [vmem:[#allocation2 + $0xa8] sm:$0xff] %vm662_vm1, %v554_v51  ;;  %918 = vxpose.xlu0.b32.start.end [1/1] (short) (narrow) %v916_v52, 8 }
 0x150   : > { %v4446_v54 = vpop.f32.mrf.mxu0  ;;  %v1936_v59 = vld [vmem:[#allocation2 + $0xb0] sm:$0xff] }
 0x151   : > { %689 = vst.msk [vmem:[#allocation2 + $0xd0] sm:$0xff] %vm662_vm1, %v4446_v54 }
 0x152   : > { %v567_v55 = vpop.f32.mrf.mxu0  ;;  %v1528_v56 = vld [vmem:[#allocation2 + $0xa0] sm:$0xff] }
 0x153   : > { %687 = vst.msk [vmem:[#allocation2 + $0xc0] sm:$0xff] %vm662_vm1, %v567_v55  ;;  %1530 = vxpose.xlu0.b32.start.end [1/1] (short) (narrow) %v1528_v56, 8 }
 0x154   : > { %v4447_v58 = vpop.f32.mrf.mxu0  ;;  %v2140_v19 = vld [vmem:[#allocation2 + $0xb8] sm:$0xff] }
 0x155   : > { %690 = vst.msk [vmem:[#allocation2 + $0xd8] sm:$0xff] %vm662_vm1, %v4447_v58 }
 0x156   : > { %v570_v60 = vpop.f32.mrf.mxu0  ;;  %v1732_v18 = vld [vmem:[#allocation2 + $0xa8] sm:$0xff] }
 0x157   : > { %688 = vst.msk [vmem:[#allocation2 + $0xc8] sm:$0xff] %vm662_vm1, %v570_v60  ;;  %1938 = vxpose.xlu0.b32.start.end [1/1] (short) (narrow) %v1936_v59, 8  ;;  %1734 = vxpose.xlu1.b32.start.end [1/1] (short) (narrow) %v1732_v18, 8 }
 0x158   : > { %v4450_v62 = vpop.f32.mrf.mxu0  ;;  %v2752_v2 = vld [vmem:[#allocation2 + $0xd0] sm:$0xff] }
 0x159   : > { %693 = vst.msk [vmem:[#allocation2 + $0xf0] sm:$0xff] %vm662_vm1, %v4450_v62 }
 0x15a   : > { %v583_v63 = vpop.f32.mrf.mxu0  ;;  %v2344_v0 = vld [vmem:[#allocation2 + $0xc0] sm:$0xff] }
 0x15b   : > { %691 = vst.msk [vmem:[#allocation2 + $0xe0] sm:$0xff] %vm662_vm1, %v583_v63  ;;  %2346 = vxpose.xlu0.b32.start.end [1/1] (short) (narrow) %v2344_v0, 8  ;;  %2142 = vxpose.xlu1.b32.start.end [1/1] (short) (narrow) %v2140_v19, 8 }
 0x15c   : > { %v4451_v21 = vpop.f32.mrf.mxu0  ;;  %v2956_v24 = vld [vmem:[#allocation2 + $0xd8] sm:$0xff] }
 0x15d   : > { %694 = vst.msk [vmem:[#allocation2 + $0xf8] sm:$0xff] %vm662_vm1, %v4451_v21 }
 0x15e   : > { %v586_v22 = vpop.f32.mrf.mxu0  ;;  %v2548_v23 = vld [vmem:[#allocation2 + $0xc8] sm:$0xff] }
 0x15f   : > { %2754 = vxpose.xlu0.b32.start.end [1/1] (short) (narrow) %v2752_v2, 8  ;;  %692 = vst.msk [vmem:[#allocation2 + $0xe8] sm:$0xff] %vm662_vm1, %v586_v22  ;;  %2550 = vxpose.xlu1.b32.start.end [1/1] (short) (narrow) %v2548_v23, 8 }
 0x160   : > { %v3568_v4 = vld [vmem:[#allocation2 + $0xf0] sm:$0xff]  ;;  %v4454_v25 = vpop.f32.mrf.mxu0 }
 0x161   : > { %697 = vst.msk [vmem:[#allocation2 + $0x110] sm:$0xff] %vm662_vm1, %v4454_v25 }
 0x162   : > { %v3160_v3 = vld [vmem:[#allocation2 + $0xe0] sm:$0xff]  ;;  %v599_v26 = vpop.f32.mrf.mxu0 }
 0x163   : > { %3162 = vxpose.xlu0.b32.start.end [1/1] (short) (narrow) %v3160_v3, 8  ;;  %2958 = vxpose.xlu1.b32.start.end [1/1] (short) (narrow) %v2956_v24, 8  ;;  %695 = vst.msk [vmem:[#allocation2 + $0x100] sm:$0xff] %vm662_vm1, %v599_v26 }
 0x164   : > { %v4455_v28 = vpop.f32.mrf.mxu0  ;;  %v3772_v29 = vld [vmem:[#allocation2 + $0xf8] sm:$0xff] }
 0x165   : > { %698 = vst.msk [vmem:[#allocation2 + $0x118] sm:$0xff] %vm662_vm1, %v4455_v28 }
 0x166   : > { %v3364_v27 = vld [vmem:[#allocation2 + $0xe8] sm:$0xff]  ;;  %v602_v30 = vpop.f32.mrf.mxu0 }
 0x167   : > { %3570 = vxpose.xlu0.b32.start.end [1/1] (short) (narrow) %v3568_v4, 8  ;;  %3366 = vxpose.xlu1.b32.start.end [1/1] (short) (narrow) %v3364_v27, 8  ;;  %696 = vst.msk [vmem:[#allocation2 + $0x108] sm:$0xff] %vm662_vm1, %v602_v30 }
 0x16a   : > { %v713_v43 = vld [vmem:[#allocation2 + $0x100] sm:$0xff] }
 0x16b   : > { %3774 = vxpose.xlu1.b32.start.end [1/1] (short) (narrow) %v3772_v29, 8 }
 0x16e   : > { %v917_v8 = vld [vmem:[#allocation2 + $0x108] sm:$0xff] }
 0x1c7   : > { %v730_v9 = vpop.trf.xlu0 }
 0x1c8   : > { %4471 = vmatmul.mubr.msk.f32.vlgmr.msra.gmra.mxu1 %vm662_vm1, %v730_v9  ;;  %v1119_v9 = vld [vmem:[#allocation2 + $0x10] sm:$0xff] }
 0x1c9   : > { %4475 = vmatprep.mubr.msk.f32.mxu1 %vm4973_vm0, %v4972_v20 }
 0x1cb   : > { %v934_v10 = vpop.trf.xlu0 }
 0x1cf   : > { %v5177_v11 = vpop.trf.xlu0 }
 0x1d3   : > { %v5179_v12 = vpop.trf.xlu0 }
 0x1d7   : > { %v5181_v13 = vpop.trf.xlu0 }
 0x1db   : > { %v5183_v14 = vpop.trf.xlu0 }
 0x1df   : > { %v5185_v15 = vpop.trf.xlu0 }
 0x1e3   : > { %v3586_v16 = vpop.trf.xlu0 }
 0x1e4   : > { %4611 = vmatmul.mubr.msk.f32.vlgmr.msra.gmra.mxu0 %vm662_vm1, %v3586_v16 }
 0x1e5   : > { %4619 = vmatpush3.msra.mxu0 %v3771_v17  ;;  %4620 = vmatprep.mubr.msk.f32.mxu0 %vm4973_vm0, %v4972_v20 }
 0x1e6   : > { %4628 = vmatprep.subr.bf16.mxu0 %v4972_v20 }
 0x288   : > { %v815_v31 = vpop.f32.mrf.mxu1 }
 0x289   : > { %v819_v32 = vsel %vm662_vm1, %v815_v31, -inf }
 0x28a   : > { %v820_v33 = vrot.slane %v819_v32, 4  ;;  %v4472_v34 = vpop.f32.mrf.mxu1 }
 0x28c   : > { %v821_v35 = vmax.f32 %v819_v32, %v820_v33 }
 0x28e   : > { %v822_v36 = vrot.slane %v821_v35, 2 }
 0x290   : > { %v823_v37 = vmax.f32 %v821_v35, %v822_v36 }
 0x292   : > { %v824_v38 = vrot.slane %v823_v37, 1 }
 0x294   : > { %v825_v39 = vmax.f32 %v823_v37, %v824_v38 }
 0x296   : > { %v826_v40 = vsub.f32 %v815_v31, %v825_v39 }
 0x298   : > { %v827_v41 = vmul.f32 1.442695, %v826_v40 }
 0x29a   : > { %4753 = vpow2.f32 %v827_v41 }
 0x2a7   : > { %v4754_v42 = vpop.eup %4753 }
 0x2a8   : > { %4474 = vmatpush3.msra.mxu1 %v4754_v42  ;;  %v829_v45 = vsel %vm662_vm1, %v4754_v42, 0.0 }
 0x2a9   : > { %4476 = vmatmul.mubr.msk.f32.vlgmr.msra.gmra.mxu1 %vm662_vm1, %v713_v43  ;;  %4478 = vmatprep.subr.mxu1 %v4972_v20  ;;  %v830_v46 = vrot.slane %v829_v45, 4 }
 0x2aa   : > { %4479 = vmatpush3.msra.mxu1 %v915_v44  ;;  %4480 = vmatprep.mubr.msk.f32.mxu1 %vm4973_vm0, %v4972_v20  ;;  %v1121_v44 = vld [vmem:[#allocation2 + $0x110] sm:$0xff] }
 0x2ab   : > { %4483 = vmatprep.subr.mxu1 %v4972_v20  ;;  %v831_v47 = vadd.f32 %v830_v46, %v829_v45  ;;  %v1323_v45 = vld [vmem:[#allocation2 + $0x18] sm:$0xff] }
 0x2ad   : > { %4481 = vmatmul.mubr.msk.f32.vlgmr.msra.gmra.mxu1 %vm662_vm1, %v934_v10  ;;  %v832_v48 = vrot.slane %v831_v47, 2  ;;  %v1138_v10 = vpop.trf.xlu1 }
 0x2ae   : > { %4485 = vmatprep.mubr.msk.f32.mxu1 %vm4973_vm0, %v4972_v20 }
 0x2af   : > { %v833_v49 = vadd.f32 %v832_v48, %v831_v47 }
 0x2b1   : > { %v834_v50 = vrot.slane %v833_v49, 1  ;;  %v1342_v46 = vpop.trf.xlu1 }
 0x2b3   : > { %v835_v51 = vadd.f32 %v834_v50, %v833_v49 }
 0x2b5   : > { %4755 = vrcp.f32 %v835_v51 }
 0x2c2   : > { %v4756_v52 = vpop.eup %4755 }
 0x2c3   : > { %v837_v53 = vmul.f32 %v4756_v52, %v835_v51 }
 0x2c5   : > { %v838_v54 = vsub.f32 2.0, %v837_v53 }
 0x2c7   : > { %v839_v55 = vmul.f32 %v4756_v52, %v838_v54 }
 0x369   : > { %v909_v56 = vpop.f32.mrf.mxu1 }
 0x36a   : > { %v913_v57 = vmul.f32 %v909_v56, %v839_v55 }
 0x36b   : > { %v4477_v58 = vpop.f32.mrf.mxu1 }
 0x36c   : > { %914 = vst.msk [vmem:[#allocation3] sm:$0xff] %vm662_vm1, %v913_v57 }
 0x36d   : > { %v1019_v59 = vpop.f32.mrf.mxu1 }
 0x36e   : > { %v1023_v60 = vsel %vm662_vm1, %v1019_v59, -inf }
 0x36f   : > { %v1024_v61 = vrot.slane %v1023_v60, 4  ;;  %v4482_v62 = vpop.f32.mrf.mxu1 }
 0x371   : > { %v1025_v63 = vmax.f32 %v1023_v60, %v1024_v61 }
 0x373   : > { %v1026_v0 = vrot.slane %v1025_v63, 2  ;;  %v3975_v1 = vld [vmem:[#allocation3] sm:$0xff] }
 0x374   : > { %3991 = vxpose.xlu0.b32.start [1/16] (narrow) %v3975_v1, 8 }
 0x375   : > { %v1027_v2 = vmax.f32 %v1025_v63, %v1026_v0 }
 0x377   : > { %v1028_v3 = vrot.slane %v1027_v2, 1 }
 0x379   : > { %v1029_v4 = vmax.f32 %v1027_v2, %v1028_v3 }
 0x37b   : > { %v1030_v5 = vsub.f32 %v1019_v59, %v1029_v4 }
 0x37d   : > { %v1031_v6 = vmul.f32 1.442695, %v1030_v5 }
 0x37f   : > { %4757 = vpow2.f32 %v1031_v6 }
 0x38c   : > { %v4758_v7 = vpop.eup %4757 }
 0x38d   : > { %4484 = vmatpush3.msra.mxu1 %v4758_v7  ;;  %v1033_v16 = vsel %vm662_vm1, %v4758_v7, 0.0 }
 0x38e   : > { %4486 = vmatmul.mubr.msk.f32.vlgmr.msra.gmra.mxu1 %vm662_vm1, %v917_v8  ;;  %4488 = vmatprep.subr.mxu1 %v4972_v20  ;;  %v1034_v17 = vrot.slane %v1033_v16, 4 }
 0x38f   : > { %4489 = vmatpush3.msra.mxu1 %v1119_v9  ;;  %4490 = vmatprep.mubr.msk.f32.mxu1 %vm4973_vm0, %v4972_v20 }
 0x390   : > { %4493 = vmatprep.subr.mxu1 %v4972_v20  ;;  %v1035_v18 = vadd.f32 %v1034_v17, %v1033_v16  ;;  %v1527_v16 = vld [vmem:[#allocation2 + $0x20] sm:$0xff]  ;;  %v4458_v17 = vpop.f32.mrf.mxu0 }
 0x391   : > { %701 = vst.msk [vmem:[#allocation2 + $0x130] sm:$0xff] %vm662_vm1, %v4458_v17 }
 0x392   : > { %4491 = vmatmul.mubr.msk.f32.vlgmr.msra.gmra.mxu1 %vm662_vm1, %v1138_v10  ;;  %v1036_v19 = vrot.slane %v1035_v18, 2  ;;  %v1325_v10 = vld [vmem:[#allocation2 + $0x118] sm:$0xff] }
 0x393   : > { %4495 = vmatprep.mubr.msk.f32.mxu1 %vm4973_vm0, %v4972_v20 }
 0x394   : > { %v1037_v21 = vadd.f32 %v1036_v19, %v1035_v18  ;;  %v615_v18 = vpop.f32.mrf.mxu0 }
 0x395   : > { %699 = vst.msk [vmem:[#allocation2 + $0x120] sm:$0xff] %vm662_vm1, %v615_v18 }
 0x396   : > { %v1038_v22 = vrot.slane %v1037_v21, 1  ;;  %v4459_v19 = vpop.f32.mrf.mxu0 }
 0x397   : > { %702 = vst.msk [vmem:[#allocation2 + $0x138] sm:$0xff] %vm662_vm1, %v4459_v19 }
 0x398   : > { %v1039_v23 = vadd.f32 %v1038_v22, %v1037_v21  ;;  %v618_v21 = vpop.f32.mrf.mxu0 }
 0x399   : > { %700 = vst.msk [vmem:[#allocation2 + $0x128] sm:$0xff] %vm662_vm1, %v618_v21  ;;  %v1935_v21 = vld [vmem:[#allocation2 + $0x30] sm:$0xff] }
 0x39a   : > { %4759 = vrcp.f32 %v1039_v23 }
 0x3a0   : > { %v1733_v19 = vld [vmem:[#allocation2 + $0x128] sm:$0xff] }
 0x3a7   : > { %v4760_v24 = vpop.eup %4759 }
 0x3a8   : > { %v1041_v25 = vmul.f32 %v4760_v24, %v1039_v23 }
 0x3aa   : > { %v1042_v26 = vsub.f32 2.0, %v1041_v25 }
 0x3ac   : > { %v1043_v27 = vmul.f32 %v4760_v24, %v1042_v26 }
 0x44e   : > { %v1113_v28 = vpop.f32.mrf.mxu1 }
 0x44f   : > { %v1117_v29 = vmul.f32 %v1113_v28, %v1043_v27 }
 0x450   : > { %v4487_v30 = vpop.f32.mrf.mxu1 }
 0x451   : > { %1118 = vst.msk [vmem:[#allocation3 + $0x8] sm:$0xff] %vm662_vm1, %v1117_v29 }
 0x452   : > { %v1223_v31 = vpop.f32.mrf.mxu1 }
 0x453   : > { %v1227_v32 = vsel %vm662_vm1, %v1223_v31, -inf }
 0x454   : > { %v1228_v33 = vrot.slane %v1227_v32, 4  ;;  %v4492_v34 = vpop.f32.mrf.mxu1 }
 0x456   : > { %v1229_v35 = vmax.f32 %v1227_v32, %v1228_v33 }
 0x458   : > { %v1230_v36 = vrot.slane %v1229_v35, 2  ;;  %v3976_v37 = vld [vmem:[#allocation3 + $0x8] sm:$0xff] }
 0x459   : > { %3992 = vxpose.xlu0.b32.cont [2/16] (narrow) %v3976_v37, 8 }
 0x45a   : > { %v1231_v38 = vmax.f32 %v1229_v35, %v1230_v36 }
 0x45c   : > { %v1232_v39 = vrot.slane %v1231_v38, 1 }
 0x45e   : > { %v1233_v40 = vmax.f32 %v1231_v38, %v1232_v39 }
 0x460   : > { %v1234_v41 = vsub.f32 %v1223_v31, %v1233_v40 }
 0x462   : > { %v1235_v42 = vmul.f32 1.442695, %v1234_v41 }
 0x464   : > { %4761 = vpow2.f32 %v1235_v42 }
 0x471   : > { %v4762_v43 = vpop.eup %4761 }
 0x472   : > { %4494 = vmatpush3.msra.mxu1 %v4762_v43  ;;  %v1237_v47 = vsel %vm662_vm1, %v4762_v43, 0.0 }
 0x473   : > { %4496 = vmatmul.mubr.msk.f32.vlgmr.msra.gmra.mxu1 %vm662_vm1, %v1121_v44  ;;  %4498 = vmatprep.subr.mxu1 %v4972_v20  ;;  %v1238_v48 = vrot.slane %v1237_v47, 4 }
 0x474   : > { %4499 = vmatpush3.msra.mxu1 %v1323_v45  ;;  %4500 = vmatprep.mubr.msk.f32.mxu1 %vm4973_vm0, %v4972_v20 }
 0x475   : > { %4503 = vmatprep.subr.mxu1 %v4972_v20  ;;  %v1239_v49 = vadd.f32 %v1238_v48, %v1237_v47  ;;  %v1529_v48 = vld [vmem:[#allocation2 + $0x120] sm:$0xff] }
 0x477   : > { %4501 = vmatmul.mubr.msk.f32.vlgmr.msra.gmra.mxu1 %vm662_vm1, %v1342_v46  ;;  %v1240_v50 = vrot.slane %v1239_v49, 2 }
 0x478   : > { %4505 = vmatprep.mubr.msk.f32.mxu1 %vm4973_vm0, %v4972_v20 }
 0x479   : > { %v1241_v51 = vadd.f32 %v1240_v50, %v1239_v49  ;;  %v1731_v49 = vld [vmem:[#allocation2 + $0x28] sm:$0xff]  ;;  %v1750_v50 = vpop.trf.xlu1 }
 0x47b   : > { %v1242_v52 = vrot.slane %v1241_v51, 1 }
 0x47d   : > { %v1243_v53 = vadd.f32 %v1242_v52, %v1241_v51 }
 0x47f   : > { %4763 = vrcp.f32 %v1243_v53 }
 0x48c   : > { %v4764_v54 = vpop.eup %4763 }
 0x48d   : > { %v1245_v55 = vmul.f32 %v4764_v54, %v1243_v53 }
 0x48f   : > { %v1246_v56 = vsub.f32 2.0, %v1245_v55 }
 0x491   : > { %v1247_v57 = vmul.f32 %v4764_v54, %v1246_v56 }
 0x533   : > { %v1317_v58 = vpop.f32.mrf.mxu1 }
 0x534   : > { %v1321_v59 = vmul.f32 %v1317_v58, %v1247_v57 }
 0x535   : > { %v4497_v60 = vpop.f32.mrf.mxu1 }
 0x536   : > { %1322 = vst.msk [vmem:[#allocation3 + $0x10] sm:$0xff] %vm662_vm1, %v1321_v59 }
 0x537   : > { %v1427_v61 = vpop.f32.mrf.mxu1 }
 0x538   : > { %v1431_v62 = vsel %vm662_vm1, %v1427_v61, -inf }
 0x539   : > { %v1432_v63 = vrot.slane %v1431_v62, 4  ;;  %v4502_v0 = vpop.f32.mrf.mxu1 }
 0x53b   : > { %v1433_v1 = vmax.f32 %v1431_v62, %v1432_v63 }
 0x53d   : > { %v1434_v2 = vrot.slane %v1433_v1, 2  ;;  %v3977_v3 = vld [vmem:[#allocation3 + $0x10] sm:$0xff] }
 0x53e   : > { %3993 = vxpose.xlu0.b32.cont [3/16] (narrow) %v3977_v3, 8 }
 0x53f   : > { %v1435_v4 = vmax.f32 %v1433_v1, %v1434_v2 }
 0x541   : > { %v1436_v5 = vrot.slane %v1435_v4, 1 }
 0x543   : > { %v1437_v6 = vmax.f32 %v1435_v4, %v1436_v5 }
 0x545   : > { %v1438_v7 = vsub.f32 %v1427_v61, %v1437_v6 }
 0x547   : > { %v1439_v8 = vmul.f32 1.442695, %v1438_v7 }
 0x549   : > { %4765 = vpow2.f32 %v1439_v8 }
 0x556   : > { %v4766_v9 = vpop.eup %4765 }
 0x557   : > { %4504 = vmatpush3.msra.mxu1 %v4766_v9  ;;  %v1441_v22 = vsel %vm662_vm1, %v4766_v9, 0.0 }
 0x558   : > { %4506 = vmatmul.mubr.msk.f32.vlgmr.msra.gmra.mxu1 %vm662_vm1, %v1325_v10  ;;  %4508 = vmatprep.subr.mxu1 %v4972_v20  ;;  %v1442_v23 = vrot.slane %v1441_v22, 4 }
 0x559   : > { %4509 = vmatpush3.msra.mxu1 %v1527_v16  ;;  %4510 = vmatprep.mubr.msk.f32.mxu1 %vm4973_vm0, %v4972_v20 }
 0x55a   : > { %4513 = vmatprep.subr.mxu1 %v4972_v20  ;;  %v1443_v24 = vadd.f32 %v1442_v23, %v1441_v22 }
 0x55c   : > { %4511 = vmatmul.mubr.msk.f32.vlgmr.msra.gmra.mxu1 %vm662_vm1, %v5177_v11  ;;  %v1444_v11 = vrot.slane %v1443_v24, 2 }
 0x55d   : > { %4515 = vmatprep.mubr.msk.f32.mxu1 %vm4973_vm0, %v4972_v20 }
 0x55e   : > { %v1445_v25 = vadd.f32 %v1444_v11, %v1443_v24 }
 0x560   : > { %v1446_v26 = vrot.slane %v1445_v25, 1 }
 0x562   : > { %v1447_v27 = vadd.f32 %v1446_v26, %v1445_v25 }
 0x564   : > { %4767 = vrcp.f32 %v1447_v27 }
 0x571   : > { %v4768_v28 = vpop.eup %4767 }
 0x572   : > { %v1449_v29 = vmul.f32 %v4768_v28, %v1447_v27 }
 0x574   : > { %v1450_v30 = vsub.f32 2.0, %v1449_v29 }
 0x576   : > { %v1451_v31 = vmul.f32 %v4768_v28, %v1450_v30 }
 0x618   : > { %v1521_v32 = vpop.f32.mrf.mxu1 }
 0x619   : > { %v1525_v33 = vmul.f32 %v1521_v32, %v1451_v31 }
 0x61a   : > { %v4507_v34 = vpop.f32.mrf.mxu1 }
 0x61b   : > { %1526 = vst.msk [vmem:[#allocation3 + $0x18] sm:$0xff] %vm662_vm1, %v1525_v33 }
 0x61c   : > { %v1631_v35 = vpop.f32.mrf.mxu1 }
 0x61d   : > { %v1635_v36 = vsel %vm662_vm1, %v1631_v35, -inf }
 0x61e   : > { %v1636_v37 = vrot.slane %v1635_v36, 4  ;;  %v4512_v38 = vpop.f32.mrf.mxu1 }
 0x620   : > { %v1637_v39 = vmax.f32 %v1635_v36, %v1636_v37 }
 0x622   : > { %v1638_v40 = vrot.slane %v1637_v39, 2  ;;  %v3978_v41 = vld [vmem:[#allocation3 + $0x18] sm:$0xff] }
 0x623   : > { %3994 = vxpose.xlu0.b32.cont [4/16] (narrow) %v3978_v41, 8 }
 0x624   : > { %v1639_v42 = vmax.f32 %v1637_v39, %v1638_v40 }
 0x626   : > { %v1640_v43 = vrot.slane %v1639_v42, 1 }
 0x628   : > { %v1641_v44 = vmax.f32 %v1639_v42, %v1640_v43 }
 0x62a   : > { %v1642_v45 = vsub.f32 %v1631_v35, %v1641_v44 }
 0x62c   : > { %v1643_v46 = vmul.f32 1.442695, %v1642_v45 }
 0x62e   : > { %4769 = vpow2.f32 %v1643_v46 }
 0x63b   : > { %v4770_v47 = vpop.eup %4769 }
 0x63c   : > { %4514 = vmatpush3.msra.mxu1 %v4770_v47  ;;  %v1645_v51 = vsel %vm662_vm1, %v4770_v47, 0.0  ;;  %v1937_v47 = vld [vmem:[#allocation2 + $0x130] sm:$0xff] }
 0x63d   : > { %4516 = vmatmul.mubr.msk.f32.vlgmr.msra.gmra.mxu1 %vm662_vm1, %v1529_v48  ;;  %4518 = vmatprep.subr.mxu1 %v4972_v20  ;;  %v1646_v52 = vrot.slane %v1645_v51, 4  ;;  %v2139_v48 = vld [vmem:[#allocation2 + $0x38] sm:$0xff] }
 0x63e   : > { %4519 = vmatpush3.msra.mxu1 %v1731_v49  ;;  %4520 = vmatprep.mubr.msk.f32.mxu1 %vm4973_vm0, %v4972_v20  ;;  %v2158_v49 = vpop.trf.xlu1 }
 0x63f   : > { %4523 = vmatprep.subr.mxu1 %v4972_v20  ;;  %v1647_v53 = vadd.f32 %v1646_v52, %v1645_v51 }
 0x641   : > { %4521 = vmatmul.mubr.msk.f32.vlgmr.msra.gmra.mxu1 %vm662_vm1, %v1750_v50  ;;  %v1648_v54 = vrot.slane %v1647_v53, 2 }
 0x642   : > { %4525 = vmatprep.mubr.msk.f32.mxu1 %vm4973_vm0, %v4972_v20 }
 0x643   : > { %v1649_v55 = vadd.f32 %v1648_v54, %v1647_v53 }
 0x645   : > { %v1650_v56 = vrot.slane %v1649_v55, 1 }
 0x647   : > { %v1651_v57 = vadd.f32 %v1650_v56, %v1649_v55 }
 0x649   : > { %4771 = vrcp.f32 %v1651_v57 }
 0x656   : > { %v4772_v58 = vpop.eup %4771 }
 0x657   : > { %v1653_v59 = vmul.f32 %v4772_v58, %v1651_v57 }
 0x659   : > { %v1654_v60 = vsub.f32 2.0, %v1653_v59 }
 0x65b   : > { %v1655_v61 = vmul.f32 %v4772_v58, %v1654_v60 }
 0x6fd   : > { %v1725_v62 = vpop.f32.mrf.mxu1 }
 0x6fe   : > { %v1729_v63 = vmul.f32 %v1725_v62, %v1655_v61 }
 0x6ff   : > { %v4517_v0 = vpop.f32.mrf.mxu1 }
 0x700   : > { %1730 = vst.msk [vmem:[#allocation3 + $0x20] sm:$0xff] %vm662_vm1, %v1729_v63 }
 0x701   : > { %v1835_v1 = vpop.f32.mrf.mxu1 }
 0x702   : > { %v1839_v2 = vsel %vm662_vm1, %v1835_v1, -inf }
 0x703   : > { %v1840_v3 = vrot.slane %v1839_v2, 4  ;;  %v4522_v4 = vpop.f32.mrf.mxu1 }
 0x705   : > { %v1841_v5 = vmax.f32 %v1839_v2, %v1840_v3 }
 0x707   : > { %v1842_v6 = vrot.slane %v1841_v5, 2  ;;  %v3979_v7 = vld [vmem:[#allocation3 + $0x20] sm:$0xff] }
 0x708   : > { %3995 = vxpose.xlu0.b32.cont [5/16] (narrow) %v3979_v7, 8 }
 0x709   : > { %v1843_v8 = vmax.f32 %v1841_v5, %v1842_v6 }
 0x70b   : > { %v1844_v9 = vrot.slane %v1843_v8, 1 }
 0x70d   : > { %v1845_v10 = vmax.f32 %v1843_v8, %v1844_v9 }
 0x70f   : > { %v1846_v16 = vsub.f32 %v1835_v1, %v1845_v10 }
 0x711   : > { %v1847_v17 = vmul.f32 1.442695, %v1846_v16 }
 0x713   : > { %4773 = vpow2.f32 %v1847_v17 }
 0x720   : > { %v4774_v18 = vpop.eup %4773 }
 0x721   : > { %4524 = vmatpush3.msra.mxu1 %v4774_v18  ;;  %v1849_v22 = vsel %vm662_vm1, %v4774_v18, 0.0  ;;  %v2141_v18 = vld [vmem:[#allocation2 + $0x138] sm:$0xff] }
 0x722   : > { %4526 = vmatmul.mubr.msk.f32.vlgmr.msra.gmra.mxu1 %vm662_vm1, %v1733_v19  ;;  %4528 = vmatprep.subr.mxu1 %v4972_v20  ;;  %v1850_v23 = vrot.slane %v1849_v22, 4  ;;  %v2343_v19 = vld [vmem:[#allocation2 + $0x40] sm:$0xff] }
 0x723   : > { %4529 = vmatpush3.msra.mxu1 %v1935_v21  ;;  %4530 = vmatprep.mubr.msk.f32.mxu1 %vm4973_vm0, %v4972_v20  ;;  %v4462_v21 = vpop.f32.mrf.mxu0 }
 0x724   : > { %4533 = vmatprep.subr.mxu1 %v4972_v20  ;;  %v1851_v24 = vadd.f32 %v1850_v23, %v1849_v22  ;;  %705 = vst.msk [vmem:[#allocation2 + $0x150] sm:$0xff] %vm662_vm1, %v4462_v21 }
 0x725   : > { %v631_v22 = vpop.f32.mrf.mxu0 }
 0x726   : > { %4531 = vmatmul.mubr.msk.f32.vlgmr.msra.gmra.mxu1 %vm662_vm1, %v5179_v12  ;;  %v1852_v11 = vrot.slane %v1851_v24, 2  ;;  %703 = vst.msk [vmem:[#allocation2 + $0x140] sm:$0xff] %vm662_vm1, %v631_v22  ;;  %v2751_v22 = vld [vmem:[#allocation2 + $0x50] sm:$0xff] }
 0x727   : > { %4535 = vmatprep.mubr.msk.f32.mxu1 %vm4973_vm0, %v4972_v20  ;;  %v4463_v23 = vpop.f32.mrf.mxu0 }
 0x728   : > { %v1853_v25 = vadd.f32 %v1852_v11, %v1851_v24  ;;  %706 = vst.msk [vmem:[#allocation2 + $0x158] sm:$0xff] %vm662_vm1, %v4463_v23 }
 0x729   : > { %v634_v24 = vpop.f32.mrf.mxu0 }
 0x72a   : > { %v1854_v26 = vrot.slane %v1853_v25, 1  ;;  %704 = vst.msk [vmem:[#allocation2 + $0x148] sm:$0xff] %vm662_vm1, %v634_v24 }
 0x72c   : > { %v1855_v27 = vadd.f32 %v1854_v26, %v1853_v25 }
 0x72e   : > { %4775 = vrcp.f32 %v1855_v27 }
 0x731   : > { %v2549_v21 = vld [vmem:[#allocation2 + $0x148] sm:$0xff] }
 0x73b   : > { %v4776_v28 = vpop.eup %4775 }
 0x73c   : > { %v1857_v29 = vmul.f32 %v4776_v28, %v1855_v27 }
 0x73e   : > { %v1858_v30 = vsub.f32 2.0, %v1857_v29 }
 0x740   : > { %v1859_v31 = vmul.f32 %v4776_v28, %v1858_v30 }
 0x7e2   : > { %v1929_v32 = vpop.f32.mrf.mxu1 }
 0x7e3   : > { %v1933_v33 = vmul.f32 %v1929_v32, %v1859_v31 }
 0x7e4   : > { %v4527_v34 = vpop.f32.mrf.mxu1 }
 0x7e5   : > { %1934 = vst.msk [vmem:[#allocation3 + $0x28] sm:$0xff] %vm662_vm1, %v1933_v33 }
 0x7e6   : > { %v2039_v12 = vpop.f32.mrf.mxu1 }
 0x7e7   : > { %v2043_v35 = vsel %vm662_vm1, %v2039_v12, -inf }
 0x7e8   : > { %v2044_v36 = vrot.slane %v2043_v35, 4  ;;  %v4532_v37 = vpop.f32.mrf.mxu1 }
 0x7ea   : > { %v2045_v38 = vmax.f32 %v2043_v35, %v2044_v36 }
 0x7ec   : > { %v2046_v39 = vrot.slane %v2045_v38, 2  ;;  %v3980_v40 = vld [vmem:[#allocation3 + $0x28] sm:$0xff] }
 0x7ed   : > { %3996 = vxpose.xlu0.b32.cont [6/16] (narrow) %v3980_v40, 8 }
 0x7ee   : > { %v2047_v41 = vmax.f32 %v2045_v38, %v2046_v39 }
 0x7f0   : > { %v2048_v42 = vrot.slane %v2047_v41, 1 }
 0x7f2   : > { %v2049_v43 = vmax.f32 %v2047_v41, %v2048_v42 }
 0x7f4   : > { %v2050_v44 = vsub.f32 %v2039_v12, %v2049_v43 }
 0x7f6   : > { %v2051_v45 = vmul.f32 1.442695, %v2050_v44 }
 0x7f8   : > { %4777 = vpow2.f32 %v2051_v45 }
 0x805   : > { %v4778_v46 = vpop.eup %4777 }
 0x806   : > { %4534 = vmatpush3.msra.mxu1 %v4778_v46  ;;  %v2053_v50 = vsel %vm662_vm1, %v4778_v46, 0.0 }
 0x807   : > { %4536 = vmatmul.mubr.msk.f32.vlgmr.msra.gmra.mxu1 %vm662_vm1, %v1937_v47  ;;  %4538 = vmatprep.subr.mxu1 %v4972_v20  ;;  %v2054_v51 = vrot.slane %v2053_v50, 4 }
 0x808   : > { %4539 = vmatpush3.msra.mxu1 %v2139_v48  ;;  %4540 = vmatprep.mubr.msk.f32.mxu1 %vm4973_vm0, %v4972_v20 }
 0x809   : > { %4543 = vmatprep.subr.mxu1 %v4972_v20  ;;  %v2055_v52 = vadd.f32 %v2054_v51, %v2053_v50  ;;  %v2547_v50 = vld [vmem:[#allocation2 + $0x48] sm:$0xff]  ;;  %v2566_v51 = vpop.trf.xlu1 }
 0x80b   : > { %4541 = vmatmul.mubr.msk.f32.vlgmr.msra.gmra.mxu1 %vm662_vm1, %v2158_v49  ;;  %v2056_v53 = vrot.slane %v2055_v52, 2  ;;  %v2345_v49 = vld [vmem:[#allocation2 + $0x140] sm:$0xff] }
 0x80c   : > { %4545 = vmatprep.mubr.msk.f32.mxu1 %vm4973_vm0, %v4972_v20 }
 0x80d   : > { %v2057_v54 = vadd.f32 %v2056_v53, %v2055_v52 }
 0x80f   : > { %v2058_v55 = vrot.slane %v2057_v54, 1 }
 0x811   : > { %v2059_v56 = vadd.f32 %v2058_v55, %v2057_v54 }
 0x813   : > { %4779 = vrcp.f32 %v2059_v56 }
 0x820   : > { %v4780_v57 = vpop.eup %4779 }
 0x821   : > { %v2061_v58 = vmul.f32 %v4780_v57, %v2059_v56 }
 0x823   : > { %v2062_v59 = vsub.f32 2.0, %v2061_v58 }
 0x825   : > { %v2063_v60 = vmul.f32 %v4780_v57, %v2062_v59 }
 0x8c7   : > { %v2133_v61 = vpop.f32.mrf.mxu1 }
 0x8c8   : > { %v2137_v62 = vmul.f32 %v2133_v61, %v2063_v60 }
 0x8c9   : > { %v4537_v63 = vpop.f32.mrf.mxu1 }
 0x8ca   : > { %2138 = vst.msk [vmem:[#allocation3 + $0x30] sm:$0xff] %vm662_vm1, %v2137_v62 }
 0x8cb   : > { %v2243_v0 = vpop.f32.mrf.mxu1 }
 0x8cc   : > { %v2247_v1 = vsel %vm662_vm1, %v2243_v0, -inf }
 0x8cd   : > { %v2248_v2 = vrot.slane %v2247_v1, 4  ;;  %v4542_v3 = vpop.f32.mrf.mxu1 }
 0x8cf   : > { %v2249_v4 = vmax.f32 %v2247_v1, %v2248_v2 }
 0x8d1   : > { %v2250_v5 = vrot.slane %v2249_v4, 2  ;;  %v3981_v6 = vld [vmem:[#allocation3 + $0x30] sm:$0xff] }
 0x8d2   : > { %3997 = vxpose.xlu0.b32.cont [7/16] (narrow) %v3981_v6, 8 }
 0x8d3   : > { %v2251_v7 = vmax.f32 %v2249_v4, %v2250_v5 }
 0x8d5   : > { %v2252_v8 = vrot.slane %v2251_v7, 1 }
 0x8d7   : > { %v2253_v9 = vmax.f32 %v2251_v7, %v2252_v8 }
 0x8d9   : > { %v2254_v10 = vsub.f32 %v2243_v0, %v2253_v9 }
 0x8db   : > { %v2255_v16 = vmul.f32 1.442695, %v2254_v10 }
 0x8dd   : > { %4781 = vpow2.f32 %v2255_v16 }
 0x8ea   : > { %v4782_v17 = vpop.eup %4781 }
 0x8eb   : > { %4544 = vmatpush3.msra.mxu1 %v4782_v17  ;;  %v2257_v11 = vsel %vm662_vm1, %v4782_v17, 0.0 }
 0x8ec   : > { %4546 = vmatmul.mubr.msk.f32.vlgmr.msra.gmra.mxu1 %vm662_vm1, %v2141_v18  ;;  %4548 = vmatprep.subr.mxu1 %v4972_v20  ;;  %v2258_v25 = vrot.slane %v2257_v11, 4 }
 0x8ed   : > { %4549 = vmatpush3.msra.mxu1 %v2343_v19  ;;  %4550 = vmatprep.mubr.msk.f32.mxu1 %vm4973_vm0, %v4972_v20 }
 0x8ee   : > { %4553 = vmatprep.subr.mxu1 %v4972_v20  ;;  %v2259_v26 = vadd.f32 %v2258_v25, %v2257_v11 }
 0x8f0   : > { %4551 = vmatmul.mubr.msk.f32.vlgmr.msra.gmra.mxu1 %vm662_vm1, %v5181_v13  ;;  %v2260_v13 = vrot.slane %v2259_v26, 2 }
 0x8f1   : > { %4555 = vmatprep.mubr.msk.f32.mxu1 %vm4973_vm0, %v4972_v20 }
 0x8f2   : > { %v2261_v27 = vadd.f32 %v2260_v13, %v2259_v26 }
 0x8f4   : > { %v2262_v28 = vrot.slane %v2261_v27, 1 }
 0x8f6   : > { %v2263_v29 = vadd.f32 %v2262_v28, %v2261_v27 }
 0x8f8   : > { %4783 = vrcp.f32 %v2263_v29 }
 0x905   : > { %v4784_v30 = vpop.eup %4783 }
 0x906   : > { %v2265_v31 = vmul.f32 %v4784_v30, %v2263_v29 }
 0x908   : > { %v2266_v32 = vsub.f32 2.0, %v2265_v31 }
 0x90a   : > { %v2267_v33 = vmul.f32 %v4784_v30, %v2266_v32 }
 0x9ac   : > { %v2337_v34 = vpop.f32.mrf.mxu1 }
 0x9ad   : > { %v2341_v12 = vmul.f32 %v2337_v34, %v2267_v33 }
 0x9ae   : > { %v4547_v35 = vpop.f32.mrf.mxu1 }
 0x9af   : > { %2342 = vst.msk [vmem:[#allocation3 + $0x38] sm:$0xff] %vm662_vm1, %v2341_v12 }
 0x9b0   : > { %v2447_v36 = vpop.f32.mrf.mxu1 }
 0x9b1   : > { %v2451_v37 = vsel %vm662_vm1, %v2447_v36, -inf }
 0x9b2   : > { %v2452_v38 = vrot.slane %v2451_v37, 4  ;;  %v4552_v39 = vpop.f32.mrf.mxu1 }
 0x9b4   : > { %v2453_v40 = vmax.f32 %v2451_v37, %v2452_v38 }
 0x9b6   : > { %v2454_v41 = vrot.slane %v2453_v40, 2  ;;  %v3982_v42 = vld [vmem:[#allocation3 + $0x38] sm:$0xff] }
 0x9b7   : > { %3998 = vxpose.xlu0.b32.cont [8/16] (narrow) %v3982_v42, 8 }
 0x9b8   : > { %v2455_v43 = vmax.f32 %v2453_v40, %v2454_v41 }
 0x9ba   : > { %v2456_v44 = vrot.slane %v2455_v43, 1 }
 0x9bc   : > { %v2457_v45 = vmax.f32 %v2455_v43, %v2456_v44 }
 0x9be   : > { %v2458_v46 = vsub.f32 %v2447_v36, %v2457_v45 }
 0x9c0   : > { %v2459_v47 = vmul.f32 1.442695, %v2458_v46  ;;  %v2753_v46 = vld [vmem:[#allocation2 + $0x150] sm:$0xff] }
 0x9c2   : > { %4785 = vpow2.f32 %v2459_v47  ;;  %v2955_v47 = vld [vmem:[#allocation2 + $0x58] sm:$0xff] }
 0x9cf   : > { %v4786_v48 = vpop.eup %4785 }
 0x9d0   : > { %4554 = vmatpush3.msra.mxu1 %v4786_v48  ;;  %v2461_v52 = vsel %vm662_vm1, %v4786_v48, 0.0  ;;  %v2974_v48 = vpop.trf.xlu1 }
 0x9d1   : > { %4556 = vmatmul.mubr.msk.f32.vlgmr.msra.gmra.mxu1 %vm662_vm1, %v2345_v49  ;;  %4558 = vmatprep.subr.mxu1 %v4972_v20  ;;  %v2462_v53 = vrot.slane %v2461_v52, 4 }
 0x9d2   : > { %4559 = vmatpush3.msra.mxu1 %v2547_v50  ;;  %4560 = vmatprep.mubr.msk.f32.mxu1 %vm4973_vm0, %v4972_v20 }
 0x9d3   : > { %4563 = vmatprep.subr.mxu1 %v4972_v20  ;;  %v2463_v54 = vadd.f32 %v2462_v53, %v2461_v52 }
 0x9d5   : > { %4561 = vmatmul.mubr.msk.f32.vlgmr.msra.gmra.mxu1 %vm662_vm1, %v2566_v51  ;;  %v2464_v55 = vrot.slane %v2463_v54, 2 }
 0x9d6   : > { %4565 = vmatprep.mubr.msk.f32.mxu1 %vm4973_vm0, %v4972_v20 }
 0x9d7   : > { %v2465_v56 = vadd.f32 %v2464_v55, %v2463_v54 }
 0x9d9   : > { %v2466_v57 = vrot.slane %v2465_v56, 1 }
 0x9db   : > { %v2467_v58 = vadd.f32 %v2466_v57, %v2465_v56 }
 0x9dd   : > { %4787 = vrcp.f32 %v2467_v58 }
 0x9ea   : > { %v4788_v59 = vpop.eup %4787 }
 0x9eb   : > { %v2469_v60 = vmul.f32 %v4788_v59, %v2467_v58 }
 0x9ed   : > { %v2470_v61 = vsub.f32 2.0, %v2469_v60 }
 0x9ef   : > { %v2471_v62 = vmul.f32 %v4788_v59, %v2470_v61 }
 0xa91   : > { %v2541_v63 = vpop.f32.mrf.mxu1 }
 0xa92   : > { %v2545_v0 = vmul.f32 %v2541_v63, %v2471_v62 }
 0xa93   : > { %v4557_v1 = vpop.f32.mrf.mxu1 }
 0xa94   : > { %2546 = vst.msk [vmem:[#allocation3 + $0x40] sm:$0xff] %vm662_vm1, %v2545_v0 }
 0xa95   : > { %v2651_v2 = vpop.f32.mrf.mxu1 }
 0xa96   : > { %v2655_v3 = vsel %vm662_vm1, %v2651_v2, -inf }
 0xa97   : > { %v2656_v4 = vrot.slane %v2655_v3, 4  ;;  %v4562_v5 = vpop.f32.mrf.mxu1 }
 0xa99   : > { %v2657_v6 = vmax.f32 %v2655_v3, %v2656_v4 }
 0xa9b   : > { %v2658_v7 = vrot.slane %v2657_v6, 2  ;;  %v3983_v8 = vld [vmem:[#allocation3 + $0x40] sm:$0xff] }
 0xa9c   : > { %3999 = vxpose.xlu0.b32.cont [9/16] (narrow) %v3983_v8, 8 }
 0xa9d   : > { %v2659_v9 = vmax.f32 %v2657_v6, %v2658_v7 }
 0xa9f   : > { %v2660_v10 = vrot.slane %v2659_v9, 1 }
 0xaa1   : > { %v2661_v16 = vmax.f32 %v2659_v9, %v2660_v10 }
 0xaa3   : > { %v2662_v17 = vsub.f32 %v2651_v2, %v2661_v16 }
 0xaa5   : > { %v2663_v18 = vmul.f32 1.442695, %v2662_v17  ;;  %v2957_v17 = vld [vmem:[#allocation2 + $0x158] sm:$0xff] }
 0xaa7   : > { %4789 = vpow2.f32 %v2663_v18  ;;  %v3159_v18 = vld [vmem:[#allocation2 + $0x60] sm:$0xff] }
 0xab4   : > { %v4790_v19 = vpop.eup %4789 }
 0xab5   : > { %4564 = vmatpush3.msra.mxu1 %v4790_v19  ;;  %v2665_v23 = vsel %vm662_vm1, %v4790_v19, 0.0  ;;  %v3382_v19 = vpop.trf.xlu1 }
 0xab6   : > { %4566 = vmatmul.mubr.msk.f32.vlgmr.msra.gmra.mxu1 %vm662_vm1, %v2549_v21  ;;  %4568 = vmatprep.subr.mxu1 %v4972_v20  ;;  %v2666_v24 = vrot.slane %v2665_v23, 4 }
 0xab7   : > { %4569 = vmatpush3.msra.mxu1 %v2751_v22  ;;  %4570 = vmatprep.mubr.msk.f32.mxu1 %vm4973_vm0, %v4972_v20  ;;  %v5343_v22 = vpop.f32.mrf.mxu0 }
 0xab8   : > { %4573 = vmatprep.subr.mxu1 %v4972_v20  ;;  %v2667_v11 = vadd.f32 %v2666_v24, %v2665_v23 }
 0xab9   : > { %v3790_v21 = vpop.trf.xlu1  ;;  %v4612_v23 = vpop.f32.mrf.mxu0 }
 0xaba   : > { %4571 = vmatmul.mubr.msk.f32.vlgmr.msra.gmra.mxu1 %vm662_vm1, %v5183_v14  ;;  %v2668_v25 = vrot.slane %v2667_v11, 2  ;;  %4621 = vmatmul.mubr.msk.f32.vlgmr.msra.gmra.mxu0 %vm662_vm1, %v3790_v21 }
 0xabb   : > { %4575 = vmatprep.mubr.msk.f32.mxu1 %vm4973_vm0, %v4972_v20  ;;  %4644 = vmatprep.mubr.msk.bf16.mxu0 %vm4973_vm0, %v4972_v20 }
 0xabc   : > { %v2669_v26 = vadd.f32 %v2668_v25, %v2667_v11 }
 0xabe   : > { %v2670_v13 = vrot.slane %v2669_v26, 1 }
 0xac0   : > { %v2671_v27 = vadd.f32 %v2670_v13, %v2669_v26 }
 0xac2   : > { %4791 = vrcp.f32 %v2671_v27 }
 0xacf   : > { %v4792_v28 = vpop.eup %4791 }
 0xad0   : > { %v2673_v29 = vmul.f32 %v4792_v28, %v2671_v27 }
 0xad2   : > { %v2674_v30 = vsub.f32 2.0, %v2673_v29 }
 0xad4   : > { %v2675_v31 = vmul.f32 %v4792_v28, %v2674_v30 }
 0xb76   : > { %v2745_v32 = vpop.f32.mrf.mxu1 }
 0xb77   : > { %v2749_v33 = vmul.f32 %v2745_v32, %v2675_v31 }
 0xb78   : > { %v4567_v34 = vpop.f32.mrf.mxu1 }
 0xb79   : > { %2750 = vst.msk [vmem:[#allocation3 + $0x48] sm:$0xff] %vm662_vm1, %v2749_v33 }
 0xb7a   : > { %v2855_v14 = vpop.f32.mrf.mxu1 }
 0xb7b   : > { %v2859_v12 = vsel %vm662_vm1, %v2855_v14, -inf }
 0xb7c   : > { %v2860_v35 = vrot.slane %v2859_v12, 4  ;;  %v4572_v36 = vpop.f32.mrf.mxu1 }
 0xb7e   : > { %v2861_v37 = vmax.f32 %v2859_v12, %v2860_v35 }
 0xb80   : > { %v2862_v38 = vrot.slane %v2861_v37, 2  ;;  %v3984_v39 = vld [vmem:[#allocation3 + $0x48] sm:$0xff] }
 0xb81   : > { %4000 = vxpose.xlu0.b32.cont [10/16] (narrow) %v3984_v39, 8 }
 0xb82   : > { %v2863_v40 = vmax.f32 %v2861_v37, %v2862_v38 }
 0xb84   : > { %v2864_v41 = vrot.slane %v2863_v40, 1 }
 0xb86   : > { %v2865_v42 = vmax.f32 %v2863_v40, %v2864_v41 }
 0xb88   : > { %v2866_v43 = vsub.f32 %v2855_v14, %v2865_v42 }
 0xb8a   : > { %v2867_v44 = vmul.f32 1.442695, %v2866_v43 }
 0xb8c   : > { %4793 = vpow2.f32 %v2867_v44 }
 0xb99   : > { %v4794_v45 = vpop.eup %4793 }
 0xb9a   : > { %4574 = vmatpush3.msra.mxu1 %v4794_v45  ;;  %v2869_v49 = vsel %vm662_vm1, %v4794_v45, 0.0 }
 0xb9b   : > { %4576 = vmatmul.mubr.msk.f32.vlgmr.msra.gmra.mxu1 %vm662_vm1, %v2753_v46  ;;  %4578 = vmatprep.subr.mxu1 %v4972_v20  ;;  %v2870_v50 = vrot.slane %v2869_v49, 4  ;;  %v3161_v46 = vld [vmem:[#allocation2 + $0x160] sm:$0xff] }
 0xb9c   : > { %4579 = vmatpush3.msra.mxu1 %v2955_v47  ;;  %4580 = vmatprep.mubr.msk.f32.mxu1 %vm4973_vm0, %v4972_v20  ;;  %v3363_v47 = vld [vmem:[#allocation2 + $0x68] sm:$0xff] }
 0xb9d   : > { %4583 = vmatprep.subr.mxu1 %v4972_v20  ;;  %v2871_v51 = vadd.f32 %v2870_v50, %v2869_v49 }
 0xb9f   : > { %4581 = vmatmul.mubr.msk.f32.vlgmr.msra.gmra.mxu1 %vm662_vm1, %v2974_v48  ;;  %v2872_v52 = vrot.slane %v2871_v51, 2  ;;  %v3875_v48 = vpop.f32.mrf.mxu0 }
 0xba0   : > { %4585 = vmatprep.mubr.msk.f32.mxu1 %vm4973_vm0, %v4972_v20 }
 0xba1   : > { %v2873_v53 = vadd.f32 %v2872_v52, %v2871_v51  ;;  %v4622_v49 = vpop.f32.mrf.mxu0 }
 0xba3   : > { %v2874_v54 = vrot.slane %v2873_v53, 1 }
 0xba5   : > { %v2875_v55 = vadd.f32 %v2874_v54, %v2873_v53 }
 0xba7   : > { %4795 = vrcp.f32 %v2875_v55 }
 0xbb4   : > { %v4796_v56 = vpop.eup %4795 }
 0xbb5   : > { %v2877_v57 = vmul.f32 %v4796_v56, %v2875_v55 }
 0xbb7   : > { %v2878_v58 = vsub.f32 2.0, %v2877_v57 }
 0xbb9   : > { %v2879_v59 = vmul.f32 %v4796_v56, %v2878_v58  ;;  %v3675_v58 = vsel %vm662_vm1, %v5343_v22, -inf }
 0xc5b   : > { %v2949_v60 = vpop.f32.mrf.mxu1 }
 0xc5c   : > { %v2953_v61 = vmul.f32 %v2949_v60, %v2879_v59  ;;  %v3676_v60 = vrot.slane %v3675_v58, 4 }
 0xc5d   : > { %v4577_v62 = vpop.f32.mrf.mxu1 }
 0xc5e   : > { %2954 = vst.msk [vmem:[#allocation3 + $0x50] sm:$0xff] %vm662_vm1, %v2953_v61  ;;  %v3879_v61 = vsel %vm662_vm1, %v3875_v48, -inf }
 0xc5f   : > { %v3059_v63 = vpop.f32.mrf.mxu1 }
 0xc60   : > { %v3063_v0 = vsel %vm662_vm1, %v3059_v63, -inf }
 0xc61   : > { %v3064_v1 = vrot.slane %v3063_v0, 4  ;;  %v4582_v2 = vpop.f32.mrf.mxu1 }
 0xc63   : > { %v3065_v3 = vmax.f32 %v3063_v0, %v3064_v1  ;;  %v3880_v0 = vrot.slane %v3879_v61, 4 }
 0xc65   : > { %v3066_v4 = vrot.slane %v3065_v3, 2  ;;  %v3985_v5 = vld [vmem:[#allocation3 + $0x50] sm:$0xff] }
 0xc66   : > { %4001 = vxpose.xlu0.b32.cont [11/16] (narrow) %v3985_v5, 8 }
 0xc67   : > { %v3067_v6 = vmax.f32 %v3065_v3, %v3066_v4  ;;  %v3881_v3 = vmax.f32 %v3879_v61, %v3880_v0 }
 0xc69   : > { %v3068_v7 = vrot.slane %v3067_v6, 1 }
 0xc6b   : > { %v3069_v8 = vmax.f32 %v3067_v6, %v3068_v7 }
 0xc6d   : > { %v3070_v9 = vsub.f32 %v3059_v63, %v3069_v8  ;;  %v3677_v63 = vmax.f32 %v3675_v58, %v3676_v60  ;;  %v3882_v8 = vrot.slane %v3881_v3, 2 }
 0xc6f   : > { %v3071_v10 = vmul.f32 1.442695, %v3070_v9  ;;  %v3678_v2 = vrot.slane %v3677_v63, 2 }
 0xc71   : > { %4797 = vpow2.f32 %v3071_v10  ;;  %v3679_v7 = vmax.f32 %v3677_v63, %v3678_v2 }
 0xc7e   : > { %v4798_v16 = vpop.eup %4797 }
 0xc7f   : > { %4584 = vmatpush3.msra.mxu1 %v4798_v16  ;;  %v3073_v24 = vsel %vm662_vm1, %v4798_v16, 0.0 }
 0xc80   : > { %4586 = vmatmul.mubr.msk.f32.vlgmr.msra.gmra.mxu1 %vm662_vm1, %v2957_v17  ;;  %4588 = vmatprep.subr.mxu1 %v4972_v20  ;;  %v3074_v11 = vrot.slane %v3073_v24, 4 }
 0xc81   : > { %4589 = vmatpush3.msra.mxu1 %v3159_v18  ;;  %4590 = vmatprep.mubr.msk.f32.mxu1 %vm4973_vm0, %v4972_v20  ;;  %v3680_v18 = vrot.slane %v3679_v7, 1 }
 0xc82   : > { %4593 = vmatprep.subr.mxu1 %v4972_v20  ;;  %v3075_v25 = vadd.f32 %v3074_v11, %v3073_v24 }
 0xc83   : > { %v3681_v11 = vmax.f32 %v3679_v7, %v3680_v18 }
 0xc84   : > { %4591 = vmatmul.mubr.msk.f32.vlgmr.msra.gmra.mxu1 %vm662_vm1, %v5185_v15  ;;  %v3076_v26 = vrot.slane %v3075_v25, 2 }
 0xc85   : > { %4595 = vmatprep.mubr.msk.f32.mxu1 %vm4973_vm0, %v4972_v20 }
 0xc86   : > { %v3077_v13 = vadd.f32 %v3076_v26, %v3075_v25 }
 0xc88   : > { %v3078_v15 = vrot.slane %v3077_v13, 1 }
 0xc8a   : > { %v3079_v27 = vadd.f32 %v3078_v15, %v3077_v13  ;;  %v3682_v15 = vsub.f32 %v5343_v22, %v3681_v11  ;;  %v3569_v22 = vld [vmem:[#allocation2 + $0x170] sm:$0xff] }
 0xc8c   : > { %4799 = vrcp.f32 %v3079_v27 }
 0xc99   : > { %v4800_v28 = vpop.eup %4799 }
 0xc9a   : > { %v3081_v29 = vmul.f32 %v4800_v28, %v3079_v27 }
 0xc9c   : > { %v3082_v30 = vsub.f32 2.0, %v3081_v29 }
 0xc9e   : > { %v3083_v31 = vmul.f32 %v4800_v28, %v3082_v30  ;;  %v3683_v30 = vmul.f32 1.442695, %v3682_v15 }
 0xd40   : > { %v3153_v32 = vpop.f32.mrf.mxu1 }
 0xd41   : > { %v3157_v33 = vmul.f32 %v3153_v32, %v3083_v31 }
 0xd42   : > { %v4587_v34 = vpop.f32.mrf.mxu1 }
 0xd43   : > { %3158 = vst.msk [vmem:[#allocation3 + $0x58] sm:$0xff] %vm662_vm1, %v3157_v33 }
 0xd44   : > { %v3263_v14 = vpop.f32.mrf.mxu1 }
 0xd45   : > { %v3267_v12 = vsel %vm662_vm1, %v3263_v14, -inf }
 0xd46   : > { %v3268_v35 = vrot.slane %v3267_v12, 4  ;;  %v4592_v36 = vpop.f32.mrf.mxu1 }
 0xd47   : > { %v3773_v36 = vld [vmem:[#allocation2 + $0x178] sm:$0xff] }
 0xd48   : > { %v3269_v37 = vmax.f32 %v3267_v12, %v3268_v35 }
 0xd4a   : > { %v3270_v38 = vrot.slane %v3269_v37, 2  ;;  %v3986_v39 = vld [vmem:[#allocation3 + $0x58] sm:$0xff] }
 0xd4b   : > { %4002 = vxpose.xlu0.b32.cont [12/16] (narrow) %v3986_v39, 8  ;;  %v4747_v39 = vld [vmem:[#allocation9 + $0x28] sm:$0xff]  }
 0xd4c   : > { %v3271_v40 = vmax.f32 %v3269_v37, %v3270_v38  ;;  %v4745_v37 = vld [vmem:[#allocation9 + $0x38] sm:$0xff]   ;;  %v4746_v38 = vld [vmem:[#allocation9 + $0x30] sm:$0xff]  }
 0xd4d   : > { %4629 = vmatpush3.bf16.msra.mxu0 %v4745_v37 }
 0xd4e   : > { %v3272_v41 = vrot.slane %v3271_v40, 1  ;;  %4630 = vmatprep.subr.bf16.mxu0 %v4972_v20 }
 0xd50   : > { %v3273_v42 = vmax.f32 %v3271_v40, %v3272_v41  ;;  %v4748_v40 = vld [vmem:[#allocation9 + $0x20] sm:$0xff]   ;;  %v4749_v41 = vld [vmem:[#allocation9 + $0x18] sm:$0xff]  }
 0xd51   : > { %4631 = vmatpush3.bf16.msra.mxu0 %v4746_v38 }
 0xd52   : > { %v3274_v43 = vsub.f32 %v3263_v14, %v3273_v42  ;;  %v3365_v14 = vld [vmem:[#allocation2 + $0x168] sm:$0xff]  ;;  %4632 = vmatprep.subr.bf16.mxu0 %v4972_v20  ;;  %v4750_v42 = vld [vmem:[#allocation9 + $0x10] sm:$0xff]  }
 0xd54   : > { %v3275_v44 = vmul.f32 1.442695, %v3274_v43  ;;  %v4751_v43 = vld [vmem:[#allocation9 + $0x8] sm:$0xff]  }
 0xd55   : > { %4633 = vmatpush3.bf16.msra.mxu0 %v4747_v39 }
 0xd56   : > { %4801 = vpow2.f32 %v3275_v44  ;;  %4634 = vmatprep.subr.bf16.mxu0 %v4972_v20  ;;  %v4752_v44 = vld [vmem:[#allocation9] sm:$0xff]  }
 0xd59   : > { %4635 = vmatpush3.bf16.msra.mxu0 %v4748_v40 }
 0xd5a   : > { %4636 = vmatprep.subr.bf16.mxu0 %v4972_v20 }
 0xd5d   : > { %4637 = vmatpush3.bf16.msra.mxu0 %v4749_v41 }
 0xd5e   : > { %4638 = vmatprep.subr.bf16.mxu0 %v4972_v20 }
 0xd61   : > { %4639 = vmatpush3.bf16.msra.mxu0 %v4750_v42 }
 0xd62   : > { %4640 = vmatprep.subr.bf16.mxu0 %v4972_v20 }
 0xd63   : > { %v4802_v45 = vpop.eup %4801 }
 0xd64   : > { %4594 = vmatpush3.msra.mxu1 %v4802_v45  ;;  %v3277_v50 = vsel %vm662_vm1, %v4802_v45, 0.0 }
 0xd65   : > { %4596 = vmatmul.mubr.msk.f32.vlgmr.msra.gmra.mxu1 %vm662_vm1, %v3161_v46  ;;  %4598 = vmatprep.subr.mxu1 %v4972_v20  ;;  %v3278_v51 = vrot.slane %v3277_v50, 4 }
 0xd66   : > { %4599 = vmatpush3.msra.mxu1 %v3363_v47  ;;  %4600 = vmatprep.mubr.msk.f32.mxu1 %vm4973_vm0, %v4972_v20 }
 0xd67   : > { %4603 = vmatprep.subr.mxu1 %v4972_v20  ;;  %v3279_v52 = vadd.f32 %v3278_v51, %v3277_v50  ;;  %4641 = vmatpush3.bf16.msra.mxu0 %v4751_v43 }
 0xd68   : > { %4642 = vmatprep.subr.bf16.mxu0 %v4972_v20 }
 0xd69   : > { %4601 = vmatmul.mubr.msk.f32.vlgmr.msra.gmra.mxu1 %vm662_vm1, %v3382_v19  ;;  %v3280_v53 = vrot.slane %v3279_v52, 2  ;;  %v3883_v19 = vmax.f32 %v3881_v3, %v3882_v8 }
 0xd6a   : > { %4605 = vmatprep.mubr.msk.f32.mxu1 %vm4973_vm0, %v4972_v20 }
 0xd6b   : > { %v3281_v54 = vadd.f32 %v3280_v53, %v3279_v52  ;;  %v3884_v25 = vrot.slane %v3883_v19, 1  ;;  %4643 = vmatpush3.bf16.msra.mxu0 %v4752_v44 }
 0xd6d   : > { %v3282_v55 = vrot.slane %v3281_v54, 1  ;;  %v3885_v27 = vmax.f32 %v3883_v19, %v3884_v25 }
 0xd6f   : > { %v3283_v56 = vadd.f32 %v3282_v55, %v3281_v54  ;;  %v3886_v31 = vsub.f32 %v3875_v48, %v3885_v27 }
 0xd71   : > { %4803 = vrcp.f32 %v3283_v56  ;;  %v3887_v33 = vmul.f32 1.442695, %v3886_v31  ;;  %v4307_v31 = vld [vmem:[%s5440_s3] ss:$0 sm:$0xff] }
 0xd7e   : > { %v4804_v57 = vpop.eup %4803 }
 0xd7f   : > { %v3285_v59 = vmul.f32 %v4804_v57, %v3283_v56 }
 0xd81   : > { %v3286_v62 = vsub.f32 2.0, %v3285_v59 }
 0xd83   : > { %v3287_v1 = vmul.f32 %v4804_v57, %v3286_v62 }
 0xe25   : > { %v3357_v4 = vpop.f32.mrf.mxu1 }
 0xe26   : > { %v3361_v5 = vmul.f32 %v3357_v4, %v3287_v1 }
 0xe27   : > { %v4597_v6 = vpop.f32.mrf.mxu1 }
 0xe28   : > { %3362 = vst.msk [vmem:[#allocation3 + $0x60] sm:$0xff] %vm662_vm1, %v3361_v5 }
 0xe29   : > { %v3467_v9 = vpop.f32.mrf.mxu1 }
 0xe2a   : > { %v3471_v10 = vsel %vm662_vm1, %v3467_v9, -inf }
 0xe2b   : > { %v3472_v16 = vrot.slane %v3471_v10, 4  ;;  %v4602_v17 = vpop.f32.mrf.mxu1 }
 0xe2d   : > { %v3473_v21 = vmax.f32 %v3471_v10, %v3472_v16 }
 0xe2f   : > { %v3474_v23 = vrot.slane %v3473_v21, 2  ;;  %v3987_v24 = vld [vmem:[#allocation3 + $0x60] sm:$0xff] }
 0xe30   : > { %4003 = vxpose.xlu0.b32.cont [13/16] (narrow) %v3987_v24, 8 }
 0xe31   : > { %v3475_v26 = vmax.f32 %v3473_v21, %v3474_v23 }
 0xe33   : > { %v3476_v13 = vrot.slane %v3475_v26, 1 }
 0xe35   : > { %v3477_v28 = vmax.f32 %v3475_v26, %v3476_v13 }
 0xe37   : > { %v3478_v29 = vsub.f32 %v3467_v9, %v3477_v28 }
 0xe39   : > { %v3479_v32 = vmul.f32 1.442695, %v3478_v29 }
 0xe3b   : > { %4805 = vpow2.f32 %v3479_v32 }
 0xe3c   : > { %4807 = vpow2.f32 %v3683_v30 }
 0xe3d   : > { %4809 = vpow2.f32 %v3887_v33 }
 0xe48   : > { %v4806_v34 = vpop.eup %4805 }
 0xe49   : > { %4604 = vmatpush3.msra.mxu1 %v4806_v34  ;;  %v4808_v12 = vpop.eup %4807  ;;  %v3481_v45 = vsel %vm662_vm1, %v4806_v34, 0.0 }
 0xe4a   : > { %4606 = vmatmul.mubr.msk.f32.vlgmr.msra.gmra.mxu1 %vm662_vm1, %v3365_v14  ;;  %4613 = vmatprep.subr.mxu1 %v4972_v20  ;;  %v4810_v35 = vpop.eup %4809  ;;  %v3482_v46 = vrot.slane %v3481_v45, 4  ;;  %v3685_v47 = vsel %vm662_vm1, %v4808_v12, 0.0 }
 0xe4b   : > { %4614 = vmatpush3.msra.mxu1 %v4808_v12  ;;  %4615 = vmatprep.mubr.msk.f32.mxu1 %vm4973_vm0, %v4972_v20  ;;  %v3686_v49 = vrot.slane %v3685_v47, 4  ;;  %v3889_v50 = vsel %vm662_vm1, %v4810_v35, 0.0 }
 0xe4c   : > { %4623 = vmatprep.subr.mxu1 %v4972_v20  ;;  %v3483_v48 = vadd.f32 %v3482_v46, %v3481_v45  ;;  %v3890_v53 = vrot.slane %v3889_v50, 4 }
 0xe4d   : > { %v3687_v52 = vadd.f32 %v3686_v49, %v3685_v47 }
 0xe4e   : > { %4616 = vmatmul.mubr.msk.f32.vlgmr.msra.gmra.mxu1 %vm662_vm1, %v3569_v22  ;;  %v3484_v51 = vrot.slane %v3483_v48, 2  ;;  %v3891_v56 = vadd.f32 %v3890_v53, %v3889_v50 }
 0xe4f   : > { %4624 = vmatpush3.msra.mxu1 %v4810_v35  ;;  %4625 = vmatprep.mubr.msk.f32.mxu1 %vm4973_vm0, %v4972_v20  ;;  %v3688_v55 = vrot.slane %v3687_v52, 2 }
 0xe50   : > { %v3485_v54 = vadd.f32 %v3484_v51, %v3483_v48  ;;  %v3892_v59 = vrot.slane %v3891_v56, 2 }
 0xe51   : > { %v3689_v58 = vadd.f32 %v3688_v55, %v3687_v52 }
 0xe52   : > { %4626 = vmatmul.mubr.msk.f32.vlgmr.msra.gmra.mxu1 %vm662_vm1, %v3773_v36  ;;  %v3486_v57 = vrot.slane %v3485_v54, 1  ;;  %v3893_v61 = vadd.f32 %v3892_v59, %v3891_v56 }
 0xe53   : > { %v3690_v60 = vrot.slane %v3689_v58, 1 }
 0xe54   : > { %v3487_v20 = vadd.f32 %v3486_v57, %v3485_v54  ;;  %v3894_v63 = vrot.slane %v3893_v61, 1 }
 0xe55   : > { %v3691_v62 = vadd.f32 %v3690_v60, %v3689_v58 }
 0xe56   : > { %4811 = vrcp.f32 %v3487_v20  ;;  %v3895_v0 = vadd.f32 %v3894_v63, %v3893_v61 }
 0xe57   : > { %4813 = vrcp.f32 %v3691_v62 }
 0xe58   : > { %4815 = vrcp.f32 %v3895_v0 }
 0xe63   : > { %v4812_v1 = vpop.eup %4811 }
 0xe64   : > { %v3489_v2 = vmul.f32 %v4812_v1, %v3487_v20  ;;  %v4814_v3 = vpop.eup %4813 }
 0xe65   : > { %v3693_v5 = vmul.f32 %v4814_v3, %v3691_v62  ;;  %v4816_v6 = vpop.eup %4815 }
 0xe66   : > { %v3490_v4 = vsub.f32 2.0, %v3489_v2  ;;  %v3897_v9 = vmul.f32 %v4816_v6, %v3895_v0 }
 0xe67   : > { %v3694_v8 = vsub.f32 2.0, %v3693_v5 }
 0xe68   : > { %v3491_v7 = vmul.f32 %v4812_v1, %v3490_v4  ;;  %v3898_v19 = vsub.f32 2.0, %v3897_v9 }
 0xe69   : > { %v3695_v18 = vmul.f32 %v4814_v3, %v3694_v8 }
 0xe6a   : > { %v3899_v11 = vmul.f32 %v4816_v6, %v3898_v19 }
 0xf0a   : > { %v3561_v10 = vpop.f32.mrf.mxu1 }
 0xf0b   : > { %v3565_v16 = vmul.f32 %v3561_v10, %v3491_v7 }
 0xf0c   : > { %v4607_v17 = vpop.f32.mrf.mxu1 }
 0xf0d   : > { %3566 = vst.msk [vmem:[#allocation3 + $0x68] sm:$0xff] %vm662_vm1, %v3565_v16 }
 0xf0e   : > { %v3765_v21 = vpop.f32.mrf.mxu1 }
 0xf0f   : > { %v3769_v23 = vmul.f32 %v3765_v21, %v3695_v18 }
 0xf10   : > { %v4617_v24 = vpop.f32.mrf.mxu1 }
 0xf11   : > { %3770 = vst.msk [vmem:[#allocation3 + $0x70] sm:$0xff] %vm662_vm1, %v3769_v23 }
 0xf12   : > { %v3969_v25 = vpop.f32.mrf.mxu1 }
 0xf13   : > { %v3973_v26 = vmul.f32 %v3969_v25, %v3899_v11 }
 0xf14   : > { %v4627_v13 = vpop.f32.mrf.mxu1  ;;  %v3988_v15 = vld [vmem:[#allocation3 + $0x68] sm:$0xff] }
 0xf15   : > { %3974 = vst.msk [vmem:[#allocation3 + $0x78] sm:$0xff] %vm662_vm1, %v3973_v26  ;;  %4004 = vxpose.xlu0.b32.cont [14/16] (narrow) %v3988_v15, 8 }
 0xf18   : > { %v3989_v27 = vld [vmem:[#allocation3 + $0x70] sm:$0xff] }
 0xf19   : > { %4005 = vxpose.xlu0.b32.cont [15/16] (narrow) %v3989_v27, 8 }
 0xf1c   : > { %v3990_v28 = vld [vmem:[#allocation3 + $0x78] sm:$0xff] }
 0xf1d   : > { %4006 = vxpose.xlu0.b32.end [16/16] (narrow) %v3990_v28, 8 }
 0xf5d   : > { %v4007_v29 = vpop.trf.xlu0 }
 0xf5e   : > { %v4023_v30 = vpack.c.bf16 %v4007_v29, %v4007_v29 }
 0xf60   : > { %4645 = vmatmul.mubr.bf16.vlgmr.msra.gmra.mxu0 %v4023_v30 }
0x1020   : > { %v4129_v32 = vpop.f32.mrf.mxu0 }
0x1021   : > { %v4130_v33 = vadd.f32 %v4307_v31, %v4129_v32 }
0x1022   : > { %v4646_v34 = vpop.f32.mrf.mxu0 }
0x1023   : > { %4135 = vst [vmem:[%s241_s5] sm:$0xff] %v4130_v33 }
0x1024   : > { %v4132_v14 = vpop.f32.mrf.mxu0 }
0x1025   : > { %4910 = shalt.err (!%p4907_p9)
}
0x1026   : > { %s4911_s28 = scalar_lea.hbm %s5394_s13, 128  ;;  %s4915_s9 = scalar_lea.hbm %s5441_s4, 256 }
0x1027   : > { %p4912_p13 = scmp.ne.s32.totalorder %s5394_s13, %s4911_s28  ;;  %p4916_p4 = scmp.lt.s32.totalorder %s5394_s13, %s5441_s4 }
0x1028   : > { %p4917_p8 = scmp.lt.s32.totalorder %s4915_s9, %s4911_s28 }
0x1029   : > { %p4913_p5 = pnand %p4912_p13, %p5457_p0 }
0x102a   : > { %p4918_p3 = por %p4917_p8, %p4916_p4 }
0x102b   : > { %p4914_p10 = pneg %p4913_p5 }
0x102d   : > { %p4919_p11 = pnand %p4918_p3, %p4914_p10 }
0x102f   : > { %4922 = shalt.err (!%p4919_p11)
}
0x1030   : > { %4660 = dma.vmem_to_hbm [thread:$0]  (%p5457_p0), %s5396_s6, 128, %s5394_s13, %s4137_s25   ;;  %v4647_v12 = vpop.f32.mrf.mxu0 }
0x1031 PF: > { %s4162_s23 = sand.u32 1, %s4953_s15   ;;  %p5458_p1 = scmp.ne.s32.totalorder %s5447_s22, 0 }
0x1032   : > { %p5459_p2 = scmp.ge.s32.totalorder %s4965_s18, 2  ;;  %s4163_s29 = scalar_lea.sflag [#allocation6], %s4162_s23 }
0x1034   : > { %p4674_p6 = pnand %p5459_p2, %p5458_p1 }
0x1036   : > { %p4675_p12 = pneg %p4674_p6 }
0x1038   : > { %4948 = dma.done.wait (%p4675_p12), %s4163_s29, 128  }
0x1039   : > { %4950 = vsyncadd (%p4675_p12), %s4163_s29, 4294967168  ;;  %p18_p7 = scmp.ge.s32.totalorder %s5072_s11, 4   ;;  %s5460_s15 = smov %s4957_s16 }
0x103a   : > { %s5461_s16 = smov %s4961_s17  ;;  %s5462_s17 = smov %s5088_s20 }
0x103b   : > { %s5463_s18 = smov %s5072_s11  ;;  %20 = sbr.rel (!%p18_p7) target bundleno = 6 (0x6), region = 89 }
0x1040   :  { %4168 = vsyncpa [#allocation5], 1 }
0x1041   :  { %4170 = vsyncpa [#allocation5 + $0x1], 1 }
0x1042   :  { %4171 = vsyncpa [#allocation8], 1 }
0x1043   :  { %4172 = vsyncpa [#allocation6], 1 }
0x1044   :  { %4174 = vsyncpa [#allocation6 + $0x1], 1 }

</bundles_post_ra>
